<compile_context>
chip_gen: v7x
topology: tpu7x:2x2x1
jax: 0.10.0
libtpu: 0.0.40
codegen_flags: <defaults>
</compile_context>

<pallas_src>
import jax
import jax.numpy as jnp
import numpy as np
from jax.experimental import pallas as pl
from jax.experimental.pallas import tpu as pltpu

C_HID = 128  # ConvsLayer.hiddlayer


def _ceil8(n):
    return ((n + 7) // 8) * 8


# ---------------------------------------------------------------------------
# Fused kernel factory: conv1(k=3) -> mx1 -> resv2 -> mx2 -> resv3 -> mx3
#                       -> resv3 (reused) -> mx4
# One grid step processes BB batch elements; all intermediates live in VMEM.
# ---------------------------------------------------------------------------
def _make_kernel(BB, L1, P1, P2, P3, P4, S1, S2, S3, S4):
    C = C_HID

    def kernel(x_ref, w1_ref, rw2_ref, rw3_ref, vec_ref, o_ref,
               convbuf, slab1, slab2):
        # ---- hoist weights / per-channel vectors once per grid step ---------
        vv = vec_ref[...]                       # (8, 128) f32
        b1, rb2, s2, t2 = vv[0:1, :], vv[1:2, :], vv[2:3, :], vv[3:4, :]
        rb3, s3, t3 = vv[4:5, :], vv[5:6, :], vv[6:7, :]
        w1_0, w1_1, w1_2 = w1_ref[0], w1_ref[1], w1_ref[2]   # (emb, 128) bf16
        rw2 = rw2_ref[...]                      # (128, 128) bf16
        rw3 = rw3_ref[...]                      # (128, 128) bf16

        def pool3(src, base, count):
            # MaxPool1d(kernel=3, stride=3): three stride-3 sublane reads.
            return jnp.maximum(
                jnp.maximum(src[pl.ds(base + 0, count, 3), :],
                            src[pl.ds(base + 1, count, 3), :]),
                src[pl.ds(base + 2, count, 3), :])

        def res_flat(slab, rows, w, bias, sc, sh):
            # ResLayer on a flat (rows, 128) slab (rows = BB * per-elem stride;
            # padding rows carry garbage that never reaches a valid output).
            v = slab[pl.ds(0, rows), :]
            f = jnp.dot(v.astype(jnp.bfloat16), w,
                        preferred_element_type=jnp.float32) + bias
            xx = (f + v) * sc + sh                         # norm(features + x)
            xxx = jnp.maximum(xx, 0.0)                     # relu
            # TODO(synk): nn.Dropout() treated as identity (eval mode).
            f2 = jnp.dot(xxx.astype(jnp.bfloat16), w,
                         preferred_element_type=jnp.float32) + bias
            slab[pl.ds(0, rows), :] = jnp.maximum(f2 + f, 0.0) * sc + sh

        # ---- conv1 (3 accumulated matmuls) + mx1, per batch element ---------
        for b in range(BB):
            y = (jnp.dot(x_ref[b, pl.ds(0, L1), :].astype(jnp.bfloat16), w1_0,
                         preferred_element_type=jnp.float32)
                 + jnp.dot(x_ref[b, pl.ds(1, L1), :].astype(jnp.bfloat16), w1_1,
                           preferred_element_type=jnp.float32)
                 + jnp.dot(x_ref[b, pl.ds(2, L1), :].astype(jnp.bfloat16), w1_2,
                           preferred_element_type=jnp.float32)
                 + b1)
            base = (b % 2) * S1                 # ping-pong slot (breaks WAR dep)
            convbuf[pl.ds(base, L1), :] = y
            slab1[pl.ds(b * S2, P1), :] = pool3(convbuf, base, P1)

        # ---- resv2 on flat slab, then mx2 ------------------------------------
        res_flat(slab1, BB * S2, rw2, rb2, s2, t2)
        for b in range(BB):
            slab2[pl.ds(b * S3, P2), :] = pool3(slab1, b * S2, P2)

        # ---- resv3, then mx3 --------------------------------------------------
        res_flat(slab2, BB * S3, rw3, rb3, s3, t3)
        for b in range(BB):
            slab1[pl.ds(b * S4, P3), :] = pool3(slab2, b * S3, P3)

        # ---- resv3 reused (the PyTorch forward reuses resv3, not resv4), mx4 --
        res_flat(slab1, BB * S4, rw3, rb3, s3, t3)
        for b in range(BB):
            o_ref[b] = pool3(slab1, b * S4, P4)   # (P4, 128) lane-dense output

    return kernel


# ---------------------------------------------------------------------------
# Wrapper: one pallas_call for the whole forward.
# ---------------------------------------------------------------------------
def convs_layer_forward(x_b1le, params):
    # x_b1le: (B, 1, L, emb_dim) -- the tensor PyTorch receives before squeeze(1).
    B, _, L, emb = x_b1le.shape
    x = x_b1le[:, 0]                               # squeeze(1) -> (B, L, emb)
    # (PyTorch permutes to NCW only for Conv1d; channels-last is used here.)

    C = C_HID
    L1 = L - 2                                     # conv1 k=3, valid
    P1 = (L1 - 3) // 3 + 1
    P2 = (P1 - 3) // 3 + 1
    P3 = (P2 - 3) // 3 + 1
    P4 = (P3 - 3) // 3 + 1
    assert P4 >= 1, f"sequence length {L} too short for conv(k=3) + 4 maxpools"
    S1, S2, S3, S4 = _ceil8(L1), _ceil8(P1), _ceil8(P2), _ceil8(P3)

    # Batch blocking: BB elements per grid step, >=2 steps so 'parallel' has work.
    if B >= 16:
        BB = 8
    elif B >= 8:
        BB = 4
    elif B >= 2:
        BB = max(1, B // 2)
    else:
        BB = 1
    Bp = ((B + BB - 1) // BB) * BB
    if Bp > B:
        x = jnp.pad(x, ((0, Bp - B), (0, 0), (0, 0)))

    # bf16 MXU inputs (cast once); per-channel vectors packed into one (8,128).
    w1 = params["w1"].astype(jnp.bfloat16)         # (3, emb, 128)
    rw2 = params["rw2"].astype(jnp.bfloat16)       # (128, 128)
    rw3 = params["rw3"].astype(jnp.bfloat16)       # (128, 128)
    vecs = jnp.concatenate(
        [params["b1"], params["rb2"], params["s2"], params["t2"],
         params["rb3"], params["s3"], params["t3"],
         jnp.zeros((1, C), jnp.float32)], axis=0)  # (8, 128) f32

    kernel = _make_kernel(BB, L1, P1, P2, P3, P4, S1, S2, S3, S4)

    out = pl.pallas_call(
        kernel,
        out_shape=jax.ShapeDtypeStruct((Bp, P4, C), jnp.float32),
        grid_spec=pltpu.PrefetchScalarGridSpec(
            num_scalar_prefetch=0,
            grid=(Bp // BB,),
            in_specs=[
                pl.BlockSpec((BB, L, emb), lambda i: (i, 0, 0)),    # x (no pad)
                pl.BlockSpec((3, emb, C), lambda i: (0, 0, 0)),     # conv1 w (per tap)
                pl.BlockSpec((C, C), lambda i: (0, 0)),             # resv2 conv w
                pl.BlockSpec((C, C), lambda i: (0, 0)),             # resv3 conv w
                pl.BlockSpec((8, C), lambda i: (0, 0)),             # packed bias/BN
            ],
            out_specs=pl.BlockSpec((BB, P4, C), lambda i: (i, 0, 0)),
            scratch_shapes=[
                pltpu.VMEM((2 * S1, C), jnp.float32),   # conv1 staging (ping-pong)
                pltpu.VMEM((BB * S2, C), jnp.float32),  # slab: mx1/res2, mx3/res3
                pltpu.VMEM((BB * S3, C), jnp.float32),  # slab: mx2/res3
            ],
        ),
        compiler_params=pltpu.CompilerParams(
            dimension_semantics=("parallel",)),          # batch blocks across TCs
    )(x, w1, rw2, rw3, vecs)

    out = out[:B]
    # PyTorch flattens (B, C, P4) row-major: transpose back from channels-last.
    return jnp.transpose(out, (0, 2, 1)).reshape(B, C * P4)


# ---------------------------------------------------------------------------
# Pure-JAX reference (same math, no Pallas) for a numerical sanity check.
# ---------------------------------------------------------------------------
def reference_forward(x_b1le, params):
    x = x_b1le[:, 0]
    B, L, emb = x.shape
    L1 = L - 2
    xb = x.astype(jnp.bfloat16)
    w1 = params["w1"].astype(jnp.bfloat16)
    h = (jnp.einsum("ble,ec->blc", xb[:, 0:L1], w1[0],
                    preferred_element_type=jnp.float32)
         + jnp.einsum("ble,ec->blc", xb[:, 1:L1 + 1], w1[1],
                      preferred_element_type=jnp.float32)
         + jnp.einsum("ble,ec->blc", xb[:, 2:L1 + 2], w1[2],
                      preferred_element_type=jnp.float32)
         + params["b1"])

    def pool3(v):
        lp = (v.shape[1] - 3) // 3 + 1
        return jnp.max(v[:, :3 * lp].reshape(v.shape[0], lp, 3, v.shape[2]), axis=2)

    def res(v, w, b, sc, sh):
        wb = w.astype(jnp.bfloat16)
        f = jnp.einsum("blc,cd->bld", v.astype(jnp.bfloat16), wb,
                       preferred_element_type=jnp.float32) + b
        xxx = jnp.maximum((f + v) * sc + sh, 0.0)
        f2 = jnp.einsum("blc,cd->bld", xxx.astype(jnp.bfloat16), wb,
                        preferred_element_type=jnp.float32) + b
        return jnp.maximum(f2 + f, 0.0) * sc + sh

    h = pool3(h)
    h = res(h, params["rw2"], params["rb2"], params["s2"], params["t2"])
    h = pool3(h)
    h = res(h, params["rw3"], params["rb3"], params["s3"], params["t3"])
    h = pool3(h)
    h = res(h, params["rw3"], params["rb3"], params["s3"], params["t3"])  # reused
    h = pool3(h)
    return jnp.transpose(h, (0, 2, 1)).reshape(B, -1)


# ---------------------------------------------------------------------------
# Parameter construction (PyTorch layouts converted to matmul-friendly ones).
# ---------------------------------------------------------------------------
def init_params(key, emb_dim):
    C = C_HID
    eps = 1e-5
    ks = jax.random.split(key, 16)

    def bn_affine(kg, kb, km, kv):
        # BatchNorm1d folded to eval-mode affine: y = x*scale + shift
        gamma = 1.0 + 0.1 * jax.random.normal(kg, (C,), jnp.float32)
        beta = 0.1 * jax.random.normal(kb, (C,), jnp.float32)
        mean = 0.1 * jax.random.normal(km, (C,), jnp.float32)
        var = jax.random.uniform(kv, (C,), jnp.float32, minval=0.5, maxval=1.5)
        scale = gamma / jnp.sqrt(var + eps)
        shift = beta - mean * scale
        return scale.reshape(1, C), shift.reshape(1, C)

    # conv1: PyTorch Conv1d(emb,128,k=3).weight is (Cout,Cin,3); stored here as
    # (3, Cin, Cout) so each tap is a (Cin,128) matmul operand (no channel pad).
    w1 = jax.random.normal(ks[0], (3, emb_dim, C), jnp.float32) / jnp.sqrt(3.0 * emb_dim)
    b1 = (0.1 * jax.random.normal(ks[1], (C,), jnp.float32)).reshape(1, C)

    # ResLayer convs: Conv1d(128,128,k=1).weight (Cout,Cin,1) -> (Cin,Cout) matmul.
    rw2 = jax.random.normal(ks[2], (C, C), jnp.float32) / jnp.sqrt(float(C))
    rb2 = (0.1 * jax.random.normal(ks[3], (C,), jnp.float32)).reshape(1, C)
    s2, t2 = bn_affine(ks[4], ks[5], ks[6], ks[7])

    rw3 = jax.random.normal(ks[8], (C, C), jnp.float32) / jnp.sqrt(float(C))
    rb3 = (0.1 * jax.random.normal(ks[9], (C,), jnp.float32)).reshape(1, C)
    s3, t3 = bn_affine(ks[10], ks[11], ks[12], ks[13])

    return dict(w1=w1, b1=b1, rw2=rw2, rb2=rb2, s2=s2, t2=t2,
                rw3=rw3, rb3=rb3, s3=s3, t3=t3)


if __name__ == "__main__":
    key = jax.random.PRNGKey(0)
    k_params, k_x = jax.random.split(key)

    EMB = 32        # emb_dim
    B, L = 8, 83    # L=83: smallest L surviving conv(k=3) + four stride-3 maxpools

    params = init_params(k_params, EMB)
    x = jax.random.normal(k_x, (B, 1, L, EMB), jnp.float32)   # PyTorch input pre-squeeze

    out = jax.block_until_ready(jax.jit(convs_layer_forward)(x, params))
    assert out.shape == (B, C_HID), out.shape
    assert out.dtype == jnp.float32

    ref = jax.block_until_ready(jax.jit(reference_forward)(x, params))
    err = float(np.max(np.abs(np.asarray(out) - np.asarray(ref))))
    assert np.allclose(np.asarray(out), np.asarray(ref), rtol=2e-2, atol=2e-2), err

    print("KERNEL_OK")
</pallas_src>

<mosaic_0001>
module attributes {stable_mosaic.version = 11 : i64} {
  func.func @kernel(%arg0: i32, %arg1: memref<4x83x32xf32, #tpu.memory_space<vmem>>, %arg2: memref<3x32x128xbf16, #tpu.memory_space<vmem>>, %arg3: memref<128x128xbf16, #tpu.memory_space<vmem>>, %arg4: memref<128x128xbf16, #tpu.memory_space<vmem>>, %arg5: memref<8x128xf32, #tpu.memory_space<vmem>>, %arg6: memref<4x1x128xf32, #tpu.memory_space<vmem>>, %arg7: memref<176x128xf32, #tpu.memory_space<vmem>>, %arg8: memref<128x128xf32, #tpu.memory_space<vmem>>, %arg9: memref<64x128xf32, #tpu.memory_space<vmem>>) attributes {dimension_semantics = [#tpu.dimension_semantics<parallel>], iteration_bounds = array<i64: 2>, scalar_prefetch = 0 : i64, scratch_operands = 3 : i64, tpu.core_type = #tpu.core_type<tc>, window_params = [{transform_indices = @transform_0, window_bounds = array<i64: 4, 83, 32>}, {pipeline_mode = #tpu.pipeline_mode<synchronous>, transform_indices = @transform_1, window_bounds = array<i64: 3, 32, 128>}, {pipeline_mode = #tpu.pipeline_mode<synchronous>, transform_indices = @transform_2, window_bounds = array<i64: 128, 128>}, {pipeline_mode = #tpu.pipeline_mode<synchronous>, transform_indices = @transform_3, window_bounds = array<i64: 128, 128>}, {pipeline_mode = #tpu.pipeline_mode<synchronous>, transform_indices = @transform_4, window_bounds = array<i64: 8, 128>}, {transform_indices = @transform_5, window_bounds = array<i64: 4, 1, 128>}]} {
    %c0 = arith.constant 0 : index
    %c0_0 = arith.constant 0 : index
    %0 = vector.load %arg5[%c0, %c0_0] : memref<8x128xf32, #tpu.memory_space<vmem>>, vector<8x128xf32>
    %1 = vector.extract_strided_slice %0 {offsets = [0, 0], sizes = [1, 128], strides = [1, 1]} : vector<8x128xf32> to vector<1x128xf32>
    %2 = vector.extract_strided_slice %0 {offsets = [1, 0], sizes = [1, 128], strides = [1, 1]} : vector<8x128xf32> to vector<1x128xf32>
    %3 = vector.extract_strided_slice %0 {offsets = [2, 0], sizes = [1, 128], strides = [1, 1]} : vector<8x128xf32> to vector<1x128xf32>
    %4 = vector.extract_strided_slice %0 {offsets = [3, 0], sizes = [1, 128], strides = [1, 1]} : vector<8x128xf32> to vector<1x128xf32>
    %5 = vector.extract_strided_slice %0 {offsets = [4, 0], sizes = [1, 128], strides = [1, 1]} : vector<8x128xf32> to vector<1x128xf32>
    %6 = vector.extract_strided_slice %0 {offsets = [5, 0], sizes = [1, 128], strides = [1, 1]} : vector<8x128xf32> to vector<1x128xf32>
    %7 = vector.extract_strided_slice %0 {offsets = [6, 0], sizes = [1, 128], strides = [1, 1]} : vector<8x128xf32> to vector<1x128xf32>
    %c0_1 = arith.constant 0 : index
    %c0_2 = arith.constant 0 : index
    %c0_3 = arith.constant 0 : index
    %8 = vector.load %arg2[%c0_1, %c0_2, %c0_3] : memref<3x32x128xbf16, #tpu.memory_space<vmem>>, vector<1x32x128xbf16>
    %9 = vector.shape_cast %8 : vector<1x32x128xbf16> to vector<32x128xbf16>
    %c1 = arith.constant 1 : index
    %c0_4 = arith.constant 0 : index
    %c0_5 = arith.constant 0 : index
    %10 = vector.load %arg2[%c1, %c0_4, %c0_5] : memref<3x32x128xbf16, #tpu.memory_space<vmem>>, vector<1x32x128xbf16>
    %11 = vector.shape_cast %10 : vector<1x32x128xbf16> to vector<32x128xbf16>
    %c2 = arith.constant 2 : index
    %c0_6 = arith.constant 0 : index
    %c0_7 = arith.constant 0 : index
    %12 = vector.load %arg2[%c2, %c0_6, %c0_7] : memref<3x32x128xbf16, #tpu.memory_space<vmem>>, vector<1x32x128xbf16>
    %13 = vector.shape_cast %12 : vector<1x32x128xbf16> to vector<32x128xbf16>
    %c0_8 = arith.constant 0 : index
    %c0_9 = arith.constant 0 : index
    %14 = vector.load %arg3[%c0_8, %c0_9] : memref<128x128xbf16, #tpu.memory_space<vmem>>, vector<128x128xbf16>
    %c0_10 = arith.constant 0 : index
    %c0_11 = arith.constant 0 : index
    %15 = vector.load %arg4[%c0_10, %c0_11] : memref<128x128xbf16, #tpu.memory_space<vmem>>, vector<128x128xbf16>
    %c0_12 = arith.constant 0 : index
    %c0_13 = arith.constant 0 : index
    %c0_14 = arith.constant 0 : index
    %16 = vector.load %arg1[%c0_12, %c0_13, %c0_14] : memref<4x83x32xf32, #tpu.memory_space<vmem>>, vector<1x81x32xf32>
    %17 = vector.shape_cast %16 : vector<1x81x32xf32> to vector<81x32xf32>
    %18 = arith.truncf %17 : vector<81x32xf32> to vector<81x32xbf16>
    %cst = arith.constant dense<0.000000e+00> : vector<81x128xf32>
    %19 = tpu.matmul %18, %9, %cst {dimension_numbers = #tpu.dot_dimension_numbers<[1], [0], [0], [1], [0, 0, 1, 1], [], []>} : vector<81x32xbf16>, vector<32x128xbf16>, vector<81x128xf32> -> vector<81x128xf32>
    %c0_15 = arith.constant 0 : index
    %c1_16 = arith.constant 1 : index
    %c0_17 = arith.constant 0 : index
    %20 = vector.load %arg1[%c0_15, %c1_16, %c0_17] : memref<4x83x32xf32, #tpu.memory_space<vmem>>, vector<1x81x32xf32>
    %21 = vector.shape_cast %20 : vector<1x81x32xf32> to vector<81x32xf32>
    %22 = arith.truncf %21 : vector<81x32xf32> to vector<81x32xbf16>
    %cst_18 = arith.constant dense<0.000000e+00> : vector<81x128xf32>
    %23 = tpu.matmul %22, %11, %cst_18 {dimension_numbers = #tpu.dot_dimension_numbers<[1], [0], [0], [1], [0, 0, 1, 1], [], []>} : vector<81x32xbf16>, vector<32x128xbf16>, vector<81x128xf32> -> vector<81x128xf32>
    %24 = arith.addf %19, %23 : vector<81x128xf32>
    %c0_19 = arith.constant 0 : index
    %c2_20 = arith.constant 2 : index
    %c0_21 = arith.constant 0 : index
    %25 = vector.load %arg1[%c0_19, %c2_20, %c0_21] : memref<4x83x32xf32, #tpu.memory_space<vmem>>, vector<1x81x32xf32>
    %26 = vector.shape_cast %25 : vector<1x81x32xf32> to vector<81x32xf32>
    %27 = arith.truncf %26 : vector<81x32xf32> to vector<81x32xbf16>
    %cst_22 = arith.constant dense<0.000000e+00> : vector<81x128xf32>
    %28 = tpu.matmul %27, %13, %cst_22 {dimension_numbers = #tpu.dot_dimension_numbers<[1], [0], [0], [1], [0, 0, 1, 1], [], []>} : vector<81x32xbf16>, vector<32x128xbf16>, vector<81x128xf32> -> vector<81x128xf32>
    %29 = arith.addf %24, %28 : vector<81x128xf32>
    %30 = vector.broadcast %1 : vector<1x128xf32> to vector<81x128xf32>
    %31 = arith.addf %29, %30 : vector<81x128xf32>
    %c0_23 = arith.constant 0 : index
    %c0_24 = arith.constant 0 : index
    %32 = vector.load %arg7[%c0_23, %c0_24] : memref<176x128xf32, #tpu.memory_space<vmem>>, vector<81x128xf32>
    tpu.vector_store %arg7[%c0_23, %c0_24], %31 {strides = array<i32>} : memref<176x128xf32, #tpu.memory_space<vmem>>, vector<81x128xf32>,
    %c0_25 = arith.constant 0 : index
    %c0_26 = arith.constant 0 : index
    %33 = tpu.strided_load %arg7[%c0_25, %c0_26] {strides = array<i32: 3, 1>} : memref<176x128xf32, #tpu.memory_space<vmem>>, vector<27x128xf32>
    %c1_27 = arith.constant 1 : index
    %c0_28 = arith.constant 0 : index
    %34 = tpu.strided_load %arg7[%c1_27, %c0_28] {strides = array<i32: 3, 1>} : memref<176x128xf32, #tpu.memory_space<vmem>>, vector<27x128xf32>
    %35 = arith.maximumf %33, %34 : vector<27x128xf32>
    %c2_29 = arith.constant 2 : index
    %c0_30 = arith.constant 0 : index
    %36 = tpu.strided_load %arg7[%c2_29, %c0_30] {strides = array<i32: 3, 1>} : memref<176x128xf32, #tpu.memory_space<vmem>>, vector<27x128xf32>
    %37 = arith.maximumf %35, %36 : vector<27x128xf32>
    %c0_31 = arith.constant 0 : index
    %c0_32 = arith.constant 0 : index
    %38 = vector.load %arg8[%c0_31, %c0_32] : memref<128x128xf32, #tpu.memory_space<vmem>>, vector<27x128xf32>
    tpu.vector_store %arg8[%c0_31, %c0_32], %37 {strides = array<i32>} : memref<128x128xf32, #tpu.memory_space<vmem>>, vector<27x128xf32>,
    %c1_33 = arith.constant 1 : index
    %c0_34 = arith.constant 0 : index
    %c0_35 = arith.constant 0 : index
    %39 = vector.load %arg1[%c1_33, %c0_34, %c0_35] : memref<4x83x32xf32, #tpu.memory_space<vmem>>, vector<1x81x32xf32>
    %40 = vector.shape_cast %39 : vector<1x81x32xf32> to vector<81x32xf32>
    %41 = arith.truncf %40 : vector<81x32xf32> to vector<81x32xbf16>
    %cst_36 = arith.constant dense<0.000000e+00> : vector<81x128xf32>
    %42 = tpu.matmul %41, %9, %cst_36 {dimension_numbers = #tpu.dot_dimension_numbers<[1], [0], [0], [1], [0, 0, 1, 1], [], []>} : vector<81x32xbf16>, vector<32x128xbf16>, vector<81x128xf32> -> vector<81x128xf32>
    %c1_37 = arith.constant 1 : index
    %c1_38 = arith.constant 1 : index
    %c0_39 = arith.constant 0 : index
    %43 = vector.load %arg1[%c1_37, %c1_38, %c0_39] : memref<4x83x32xf32, #tpu.memory_space<vmem>>, vector<1x81x32xf32>
    %44 = vector.shape_cast %43 : vector<1x81x32xf32> to vector<81x32xf32>
    %45 = arith.truncf %44 : vector<81x32xf32> to vector<81x32xbf16>
    %cst_40 = arith.constant dense<0.000000e+00> : vector<81x128xf32>
    %46 = tpu.matmul %45, %11, %cst_40 {dimension_numbers = #tpu.dot_dimension_numbers<[1], [0], [0], [1], [0, 0, 1, 1], [], []>} : vector<81x32xbf16>, vector<32x128xbf16>, vector<81x128xf32> -> vector<81x128xf32>
    %47 = arith.addf %42, %46 : vector<81x128xf32>
    %c1_41 = arith.constant 1 : index
    %c2_42 = arith.constant 2 : index
    %c0_43 = arith.constant 0 : index
    %48 = vector.load %arg1[%c1_41, %c2_42, %c0_43] : memref<4x83x32xf32, #tpu.memory_space<vmem>>, vector<1x81x32xf32>
    %49 = vector.shape_cast %48 : vector<1x81x32xf32> to vector<81x32xf32>
    %50 = arith.truncf %49 : vector<81x32xf32> to vector<81x32xbf16>
    %cst_44 = arith.constant dense<0.000000e+00> : vector<81x128xf32>
    %51 = tpu.matmul %50, %13, %cst_44 {dimension_numbers = #tpu.dot_dimension_numbers<[1], [0], [0], [1], [0, 0, 1, 1], [], []>} : vector<81x32xbf16>, vector<32x128xbf16>, vector<81x128xf32> -> vector<81x128xf32>
    %52 = arith.addf %47, %51 : vector<81x128xf32>
    %53 = vector.broadcast %1 : vector<1x128xf32> to vector<81x128xf32>
    %54 = arith.addf %52, %53 : vector<81x128xf32>
    %c88 = arith.constant 88 : index
    %c0_45 = arith.constant 0 : index
    %55 = vector.load %arg7[%c88, %c0_45] : memref<176x128xf32, #tpu.memory_space<vmem>>, vector<81x128xf32>
    tpu.vector_store %arg7[%c88, %c0_45], %54 {strides = array<i32>} : memref<176x128xf32, #tpu.memory_space<vmem>>, vector<81x128xf32>,
    %c88_46 = arith.constant 88 : index
    %c0_47 = arith.constant 0 : index
    %56 = tpu.strided_load %arg7[%c88_46, %c0_47] {strides = array<i32: 3, 1>} : memref<176x128xf32, #tpu.memory_space<vmem>>, vector<27x128xf32>
    %c89 = arith.constant 89 : index
    %c0_48 = arith.constant 0 : index
    %57 = tpu.strided_load %arg7[%c89, %c0_48] {strides = array<i32: 3, 1>} : memref<176x128xf32, #tpu.memory_space<vmem>>, vector<27x128xf32>
    %58 = arith.maximumf %56, %57 : vector<27x128xf32>
    %c90 = arith.constant 90 : index
    %c0_49 = arith.constant 0 : index
    %59 = tpu.strided_load %arg7[%c90, %c0_49] {strides = array<i32: 3, 1>} : memref<176x128xf32, #tpu.memory_space<vmem>>, vector<27x128xf32>
    %60 = arith.maximumf %58, %59 : vector<27x128xf32>
    %c32 = arith.constant 32 : index
    %c0_50 = arith.constant 0 : index
    %61 = vector.load %arg8[%c32, %c0_50] : memref<128x128xf32, #tpu.memory_space<vmem>>, vector<27x128xf32>
    tpu.vector_store %arg8[%c32, %c0_50], %60 {strides = array<i32>} : memref<128x128xf32, #tpu.memory_space<vmem>>, vector<27x128xf32>,
    %c2_51 = arith.constant 2 : index
    %c0_52 = arith.constant 0 : index
    %c0_53 = arith.constant 0 : index
    %62 = vector.load %arg1[%c2_51, %c0_52, %c0_53] : memref<4x83x32xf32, #tpu.memory_space<vmem>>, vector<1x81x32xf32>
    %63 = vector.shape_cast %62 : vector<1x81x32xf32> to vector<81x32xf32>
    %64 = arith.truncf %63 : vector<81x32xf32> to vector<81x32xbf16>
    %cst_54 = arith.constant dense<0.000000e+00> : vector<81x128xf32>
    %65 = tpu.matmul %64, %9, %cst_54 {dimension_numbers = #tpu.dot_dimension_numbers<[1], [0], [0], [1], [0, 0, 1, 1], [], []>} : vector<81x32xbf16>, vector<32x128xbf16>, vector<81x128xf32> -> vector<81x128xf32>
    %c2_55 = arith.constant 2 : index
    %c1_56 = arith.constant 1 : index
    %c0_57 = arith.constant 0 : index
    %66 = vector.load %arg1[%c2_55, %c1_56, %c0_57] : memref<4x83x32xf32, #tpu.memory_space<vmem>>, vector<1x81x32xf32>
    %67 = vector.shape_cast %66 : vector<1x81x32xf32> to vector<81x32xf32>
    %68 = arith.truncf %67 : vector<81x32xf32> to vector<81x32xbf16>
    %cst_58 = arith.constant dense<0.000000e+00> : vector<81x128xf32>
    %69 = tpu.matmul %68, %11, %cst_58 {dimension_numbers = #tpu.dot_dimension_numbers<[1], [0], [0], [1], [0, 0, 1, 1], [], []>} : vector<81x32xbf16>, vector<32x128xbf16>, vector<81x128xf32> -> vector<81x128xf32>
    %70 = arith.addf %65, %69 : vector<81x128xf32>
    %c2_59 = arith.constant 2 : index
    %c2_60 = arith.constant 2 : index
    %c0_61 = arith.constant 0 : index
    %71 = vector.load %arg1[%c2_59, %c2_60, %c0_61] : memref<4x83x32xf32, #tpu.memory_space<vmem>>, vector<1x81x32xf32>
    %72 = vector.shape_cast %71 : vector<1x81x32xf32> to vector<81x32xf32>
    %73 = arith.truncf %72 : vector<81x32xf32> to vector<81x32xbf16>
    %cst_62 = arith.constant dense<0.000000e+00> : vector<81x128xf32>
    %74 = tpu.matmul %73, %13, %cst_62 {dimension_numbers = #tpu.dot_dimension_numbers<[1], [0], [0], [1], [0, 0, 1, 1], [], []>} : vector<81x32xbf16>, vector<32x128xbf16>, vector<81x128xf32> -> vector<81x128xf32>
    %75 = arith.addf %70, %74 : vector<81x128xf32>
    %76 = vector.broadcast %1 : vector<1x128xf32> to vector<81x128xf32>
    %77 = arith.addf %75, %76 : vector<81x128xf32>
    %c0_63 = arith.constant 0 : index
    %c0_64 = arith.constant 0 : index
    %78 = vector.load %arg7[%c0_63, %c0_64] : memref<176x128xf32, #tpu.memory_space<vmem>>, vector<81x128xf32>
    tpu.vector_store %arg7[%c0_63, %c0_64], %77 {strides = array<i32>} : memref<176x128xf32, #tpu.memory_space<vmem>>, vector<81x128xf32>,
    %c0_65 = arith.constant 0 : index
    %c0_66 = arith.constant 0 : index
    %79 = tpu.strided_load %arg7[%c0_65, %c0_66] {strides = array<i32: 3, 1>} : memref<176x128xf32, #tpu.memory_space<vmem>>, vector<27x128xf32>
    %c1_67 = arith.constant 1 : index
    %c0_68 = arith.constant 0 : index
    %80 = tpu.strided_load %arg7[%c1_67, %c0_68] {strides = array<i32: 3, 1>} : memref<176x128xf32, #tpu.memory_space<vmem>>, vector<27x128xf32>
    %81 = arith.maximumf %79, %80 : vector<27x128xf32>
    %c2_69 = arith.constant 2 : index
    %c0_70 = arith.constant 0 : index
    %82 = tpu.strided_load %arg7[%c2_69, %c0_70] {strides = array<i32: 3, 1>} : memref<176x128xf32, #tpu.memory_space<vmem>>, vector<27x128xf32>
    %83 = arith.maximumf %81, %82 : vector<27x128xf32>
    %c64 = arith.constant 64 : index
    %c0_71 = arith.constant 0 : index
    %84 = vector.load %arg8[%c64, %c0_71] : memref<128x128xf32, #tpu.memory_space<vmem>>, vector<27x128xf32>
    tpu.vector_store %arg8[%c64, %c0_71], %83 {strides = array<i32>} : memref<128x128xf32, #tpu.memory_space<vmem>>, vector<27x128xf32>,
    %c3 = arith.constant 3 : index
    %c0_72 = arith.constant 0 : index
    %c0_73 = arith.constant 0 : index
    %85 = vector.load %arg1[%c3, %c0_72, %c0_73] : memref<4x83x32xf32, #tpu.memory_space<vmem>>, vector<1x81x32xf32>
    %86 = vector.shape_cast %85 : vector<1x81x32xf32> to vector<81x32xf32>
    %87 = arith.truncf %86 : vector<81x32xf32> to vector<81x32xbf16>
    %cst_74 = arith.constant dense<0.000000e+00> : vector<81x128xf32>
    %88 = tpu.matmul %87, %9, %cst_74 {dimension_numbers = #tpu.dot_dimension_numbers<[1], [0], [0], [1], [0, 0, 1, 1], [], []>} : vector<81x32xbf16>, vector<32x128xbf16>, vector<81x128xf32> -> vector<81x128xf32>
    %c3_75 = arith.constant 3 : index
    %c1_76 = arith.constant 1 : index
    %c0_77 = arith.constant 0 : index
    %89 = vector.load %arg1[%c3_75, %c1_76, %c0_77] : memref<4x83x32xf32, #tpu.memory_space<vmem>>, vector<1x81x32xf32>
    %90 = vector.shape_cast %89 : vector<1x81x32xf32> to vector<81x32xf32>
    %91 = arith.truncf %90 : vector<81x32xf32> to vector<81x32xbf16>
    %cst_78 = arith.constant dense<0.000000e+00> : vector<81x128xf32>
    %92 = tpu.matmul %91, %11, %cst_78 {dimension_numbers = #tpu.dot_dimension_numbers<[1], [0], [0], [1], [0, 0, 1, 1], [], []>} : vector<81x32xbf16>, vector<32x128xbf16>, vector<81x128xf32> -> vector<81x128xf32>
    %93 = arith.addf %88, %92 : vector<81x128xf32>
    %c3_79 = arith.constant 3 : index
    %c2_80 = arith.constant 2 : index
    %c0_81 = arith.constant 0 : index
    %94 = vector.load %arg1[%c3_79, %c2_80, %c0_81] : memref<4x83x32xf32, #tpu.memory_space<vmem>>, vector<1x81x32xf32>
    %95 = vector.shape_cast %94 : vector<1x81x32xf32> to vector<81x32xf32>
    %96 = arith.truncf %95 : vector<81x32xf32> to vector<81x32xbf16>
    %cst_82 = arith.constant dense<0.000000e+00> : vector<81x128xf32>
    %97 = tpu.matmul %96, %13, %cst_82 {dimension_numbers = #tpu.dot_dimension_numbers<[1], [0], [0], [1], [0, 0, 1, 1], [], []>} : vector<81x32xbf16>, vector<32x128xbf16>, vector<81x128xf32> -> vector<81x128xf32>
    %98 = arith.addf %93, %97 : vector<81x128xf32>
    %99 = vector.broadcast %1 : vector<1x128xf32> to vector<81x128xf32>
    %100 = arith.addf %98, %99 : vector<81x128xf32>
    %c88_83 = arith.constant 88 : index
    %c0_84 = arith.constant 0 : index
    %101 = vector.load %arg7[%c88_83, %c0_84] : memref<176x128xf32, #tpu.memory_space<vmem>>, vector<81x128xf32>
    tpu.vector_store %arg7[%c88_83, %c0_84], %100 {strides = array<i32>} : memref<176x128xf32, #tpu.memory_space<vmem>>, vector<81x128xf32>,
    %c88_85 = arith.constant 88 : index
    %c0_86 = arith.constant 0 : index
    %102 = tpu.strided_load %arg7[%c88_85, %c0_86] {strides = array<i32: 3, 1>} : memref<176x128xf32, #tpu.memory_space<vmem>>, vector<27x128xf32>
    %c89_87 = arith.constant 89 : index
    %c0_88 = arith.constant 0 : index
    %103 = tpu.strided_load %arg7[%c89_87, %c0_88] {strides = array<i32: 3, 1>} : memref<176x128xf32, #tpu.memory_space<vmem>>, vector<27x128xf32>
    %104 = arith.maximumf %102, %103 : vector<27x128xf32>
    %c90_89 = arith.constant 90 : index
    %c0_90 = arith.constant 0 : index
    %105 = tpu.strided_load %arg7[%c90_89, %c0_90] {strides = array<i32: 3, 1>} : memref<176x128xf32, #tpu.memory_space<vmem>>, vector<27x128xf32>
    %106 = arith.maximumf %104, %105 : vector<27x128xf32>
    %c96 = arith.constant 96 : index
    %c0_91 = arith.constant 0 : index
    %107 = vector.load %arg8[%c96, %c0_91] : memref<128x128xf32, #tpu.memory_space<vmem>>, vector<27x128xf32>
    tpu.vector_store %arg8[%c96, %c0_91], %106 {strides = array<i32>} : memref<128x128xf32, #tpu.memory_space<vmem>>, vector<27x128xf32>,
    %c0_92 = arith.constant 0 : index
    %c0_93 = arith.constant 0 : index
    %108 = vector.load %arg8[%c0_92, %c0_93] : memref<128x128xf32, #tpu.memory_space<vmem>>, vector<128x128xf32>
    %109 = arith.truncf %108 : vector<128x128xf32> to vector<128x128xbf16>
    %cst_94 = arith.constant dense<0.000000e+00> : vector<128x128xf32>
    %110 = tpu.matmul %109, %14, %cst_94 {dimension_numbers = #tpu.dot_dimension_numbers<[1], [0], [0], [1], [0, 0, 1, 1], [], []>} : vector<128x128xbf16>, vector<128x128xbf16>, vector<128x128xf32> -> vector<128x128xf32>
    %111 = vector.broadcast %2 : vector<1x128xf32> to vector<128x128xf32>
    %112 = arith.addf %110, %111 : vector<128x128xf32>
    %113 = arith.addf %112, %108 : vector<128x128xf32>
    %114 = vector.broadcast %3 : vector<1x128xf32> to vector<128x128xf32>
    %115 = arith.mulf %113, %114 : vector<128x128xf32>
    %116 = vector.broadcast %4 : vector<1x128xf32> to vector<128x128xf32>
    %117 = arith.addf %115, %116 : vector<128x128xf32>
    %cst_95 = arith.constant 0.000000e+00 : f32
    %118 = vector.broadcast %cst_95 : f32 to vector<128x128xf32>
    %119 = arith.maximumf %117, %118 : vector<128x128xf32>
    %120 = arith.truncf %119 : vector<128x128xf32> to vector<128x128xbf16>
    %cst_96 = arith.constant dense<0.000000e+00> : vector<128x128xf32>
    %121 = tpu.matmul %120, %14, %cst_96 {dimension_numbers = #tpu.dot_dimension_numbers<[1], [0], [0], [1], [0, 0, 1, 1], [], []>} : vector<128x128xbf16>, vector<128x128xbf16>, vector<128x128xf32> -> vector<128x128xf32>
    %122 = vector.broadcast %2 : vector<1x128xf32> to vector<128x128xf32>
    %123 = arith.addf %121, %122 : vector<128x128xf32>
    %124 = arith.addf %123, %112 : vector<128x128xf32>
    %cst_97 = arith.constant 0.000000e+00 : f32
    %125 = vector.broadcast %cst_97 : f32 to vector<128x128xf32>
    %126 = arith.maximumf %124, %125 : vector<128x128xf32>
    %127 = vector.broadcast %3 : vector<1x128xf32> to vector<128x128xf32>
    %128 = arith.mulf %126, %127 : vector<128x128xf32>
    %129 = vector.broadcast %4 : vector<1x128xf32> to vector<128x128xf32>
    %130 = arith.addf %128, %129 : vector<128x128xf32>
    %c0_98 = arith.constant 0 : index
    %c0_99 = arith.constant 0 : index
    %131 = vector.load %arg8[%c0_98, %c0_99] : memref<128x128xf32, #tpu.memory_space<vmem>>, vector<128x128xf32>
    tpu.vector_store %arg8[%c0_98, %c0_99], %130 {strides = array<i32>} : memref<128x128xf32, #tpu.memory_space<vmem>>, vector<128x128xf32>,
    %c0_100 = arith.constant 0 : index
    %c0_101 = arith.constant 0 : index
    %132 = tpu.strided_load %arg8[%c0_100, %c0_101] {strides = array<i32: 3, 1>} : memref<128x128xf32, #tpu.memory_space<vmem>>, vector<9x128xf32>
    %c1_102 = arith.constant 1 : index
    %c0_103 = arith.constant 0 : index
    %133 = tpu.strided_load %arg8[%c1_102, %c0_103] {strides = array<i32: 3, 1>} : memref<128x128xf32, #tpu.memory_space<vmem>>, vector<9x128xf32>
    %134 = arith.maximumf %132, %133 : vector<9x128xf32>
    %c2_104 = arith.constant 2 : index
    %c0_105 = arith.constant 0 : index
    %135 = tpu.strided_load %arg8[%c2_104, %c0_105] {strides = array<i32: 3, 1>} : memref<128x128xf32, #tpu.memory_space<vmem>>, vector<9x128xf32>
    %136 = arith.maximumf %134, %135 : vector<9x128xf32>
    %c0_106 = arith.constant 0 : index
    %c0_107 = arith.constant 0 : index
    %137 = vector.load %arg9[%c0_106, %c0_107] : memref<64x128xf32, #tpu.memory_space<vmem>>, vector<9x128xf32>
    tpu.vector_store %arg9[%c0_106, %c0_107], %136 {strides = array<i32>} : memref<64x128xf32, #tpu.memory_space<vmem>>, vector<9x128xf32>,
    %c32_108 = arith.constant 32 : index
    %c0_109 = arith.constant 0 : index
    %138 = tpu.strided_load %arg8[%c32_108, %c0_109] {strides = array<i32: 3, 1>} : memref<128x128xf32, #tpu.memory_space<vmem>>, vector<9x128xf32>
    %c33 = arith.constant 33 : index
    %c0_110 = arith.constant 0 : index
    %139 = tpu.strided_load %arg8[%c33, %c0_110] {strides = array<i32: 3, 1>} : memref<128x128xf32, #tpu.memory_space<vmem>>, vector<9x128xf32>
    %140 = arith.maximumf %138, %139 : vector<9x128xf32>
    %c34 = arith.constant 34 : index
    %c0_111 = arith.constant 0 : index
    %141 = tpu.strided_load %arg8[%c34, %c0_111] {strides = array<i32: 3, 1>} : memref<128x128xf32, #tpu.memory_space<vmem>>, vector<9x128xf32>
    %142 = arith.maximumf %140, %141 : vector<9x128xf32>
    %c16 = arith.constant 16 : index
    %c0_112 = arith.constant 0 : index
    %143 = vector.load %arg9[%c16, %c0_112] : memref<64x128xf32, #tpu.memory_space<vmem>>, vector<9x128xf32>
    tpu.vector_store %arg9[%c16, %c0_112], %142 {strides = array<i32>} : memref<64x128xf32, #tpu.memory_space<vmem>>, vector<9x128xf32>,
    %c64_113 = arith.constant 64 : index
    %c0_114 = arith.constant 0 : index
    %144 = tpu.strided_load %arg8[%c64_113, %c0_114] {strides = array<i32: 3, 1>} : memref<128x128xf32, #tpu.memory_space<vmem>>, vector<9x128xf32>
    %c65 = arith.constant 65 : index
    %c0_115 = arith.constant 0 : index
    %145 = tpu.strided_load %arg8[%c65, %c0_115] {strides = array<i32: 3, 1>} : memref<128x128xf32, #tpu.memory_space<vmem>>, vector<9x128xf32>
    %146 = arith.maximumf %144, %145 : vector<9x128xf32>
    %c66 = arith.constant 66 : index
    %c0_116 = arith.constant 0 : index
    %147 = tpu.strided_load %arg8[%c66, %c0_116] {strides = array<i32: 3, 1>} : memref<128x128xf32, #tpu.memory_space<vmem>>, vector<9x128xf32>
    %148 = arith.maximumf %146, %147 : vector<9x128xf32>
    %c32_117 = arith.constant 32 : index
    %c0_118 = arith.constant 0 : index
    %149 = vector.load %arg9[%c32_117, %c0_118] : memref<64x128xf32, #tpu.memory_space<vmem>>, vector<9x128xf32>
    tpu.vector_store %arg9[%c32_117, %c0_118], %148 {strides = array<i32>} : memref<64x128xf32, #tpu.memory_space<vmem>>, vector<9x128xf32>,
    %c96_119 = arith.constant 96 : index
    %c0_120 = arith.constant 0 : index
    %150 = tpu.strided_load %arg8[%c96_119, %c0_120] {strides = array<i32: 3, 1>} : memref<128x128xf32, #tpu.memory_space<vmem>>, vector<9x128xf32>
    %c97 = arith.constant 97 : index
    %c0_121 = arith.constant 0 : index
    %151 = tpu.strided_load %arg8[%c97, %c0_121] {strides = array<i32: 3, 1>} : memref<128x128xf32, #tpu.memory_space<vmem>>, vector<9x128xf32>
    %152 = arith.maximumf %150, %151 : vector<9x128xf32>
    %c98 = arith.constant 98 : index
    %c0_122 = arith.constant 0 : index
    %153 = tpu.strided_load %arg8[%c98, %c0_122] {strides = array<i32: 3, 1>} : memref<128x128xf32, #tpu.memory_space<vmem>>, vector<9x128xf32>
    %154 = arith.maximumf %152, %153 : vector<9x128xf32>
    %c48 = arith.constant 48 : index
    %c0_123 = arith.constant 0 : index
    %155 = vector.load %arg9[%c48, %c0_123] : memref<64x128xf32, #tpu.memory_space<vmem>>, vector<9x128xf32>
    tpu.vector_store %arg9[%c48, %c0_123], %154 {strides = array<i32>} : memref<64x128xf32, #tpu.memory_space<vmem>>, vector<9x128xf32>,
    %c0_124 = arith.constant 0 : index
    %c0_125 = arith.constant 0 : index
    %156 = vector.load %arg9[%c0_124, %c0_125] : memref<64x128xf32, #tpu.memory_space<vmem>>, vector<64x128xf32>
    %157 = arith.truncf %156 : vector<64x128xf32> to vector<64x128xbf16>
    %cst_126 = arith.constant dense<0.000000e+00> : vector<64x128xf32>
    %158 = tpu.matmul %157, %15, %cst_126 {dimension_numbers = #tpu.dot_dimension_numbers<[1], [0], [0], [1], [0, 0, 1, 1], [], []>} : vector<64x128xbf16>, vector<128x128xbf16>, vector<64x128xf32> -> vector<64x128xf32>
    %159 = vector.broadcast %5 : vector<1x128xf32> to vector<64x128xf32>
    %160 = arith.addf %158, %159 : vector<64x128xf32>
    %161 = arith.addf %160, %156 : vector<64x128xf32>
    %162 = vector.broadcast %6 : vector<1x128xf32> to vector<64x128xf32>
    %163 = arith.mulf %161, %162 : vector<64x128xf32>
    %164 = vector.broadcast %7 : vector<1x128xf32> to vector<64x128xf32>
    %165 = arith.addf %163, %164 : vector<64x128xf32>
    %cst_127 = arith.constant 0.000000e+00 : f32
    %166 = vector.broadcast %cst_127 : f32 to vector<64x128xf32>
    %167 = arith.maximumf %165, %166 : vector<64x128xf32>
    %168 = arith.truncf %167 : vector<64x128xf32> to vector<64x128xbf16>
    %cst_128 = arith.constant dense<0.000000e+00> : vector<64x128xf32>
    %169 = tpu.matmul %168, %15, %cst_128 {dimension_numbers = #tpu.dot_dimension_numbers<[1], [0], [0], [1], [0, 0, 1, 1], [], []>} : vector<64x128xbf16>, vector<128x128xbf16>, vector<64x128xf32> -> vector<64x128xf32>
    %170 = vector.broadcast %5 : vector<1x128xf32> to vector<64x128xf32>
    %171 = arith.addf %169, %170 : vector<64x128xf32>
    %172 = arith.addf %171, %160 : vector<64x128xf32>
    %cst_129 = arith.constant 0.000000e+00 : f32
    %173 = vector.broadcast %cst_129 : f32 to vector<64x128xf32>
    %174 = arith.maximumf %172, %173 : vector<64x128xf32>
    %175 = vector.broadcast %6 : vector<1x128xf32> to vector<64x128xf32>
    %176 = arith.mulf %174, %175 : vector<64x128xf32>
    %177 = vector.broadcast %7 : vector<1x128xf32> to vector<64x128xf32>
    %178 = arith.addf %176, %177 : vector<64x128xf32>
    %c0_130 = arith.constant 0 : index
    %c0_131 = arith.constant 0 : index
    %179 = vector.load %arg9[%c0_130, %c0_131] : memref<64x128xf32, #tpu.memory_space<vmem>>, vector<64x128xf32>
    tpu.vector_store %arg9[%c0_130, %c0_131], %178 {strides = array<i32>} : memref<64x128xf32, #tpu.memory_space<vmem>>, vector<64x128xf32>,
    %c0_132 = arith.constant 0 : index
    %c0_133 = arith.constant 0 : index
    %180 = tpu.strided_load %arg9[%c0_132, %c0_133] {strides = array<i32: 3, 1>} : memref<64x128xf32, #tpu.memory_space<vmem>>, vector<3x128xf32>
    %c1_134 = arith.constant 1 : index
    %c0_135 = arith.constant 0 : index
    %181 = tpu.strided_load %arg9[%c1_134, %c0_135] {strides = array<i32: 3, 1>} : memref<64x128xf32, #tpu.memory_space<vmem>>, vector<3x128xf32>
    %182 = arith.maximumf %180, %181 : vector<3x128xf32>
    %c2_136 = arith.constant 2 : index
    %c0_137 = arith.constant 0 : index
    %183 = tpu.strided_load %arg9[%c2_136, %c0_137] {strides = array<i32: 3, 1>} : memref<64x128xf32, #tpu.memory_space<vmem>>, vector<3x128xf32>
    %184 = arith.maximumf %182, %183 : vector<3x128xf32>
    %c0_138 = arith.constant 0 : index
    %c0_139 = arith.constant 0 : index
    %185 = vector.load %arg8[%c0_138, %c0_139] : memref<128x128xf32, #tpu.memory_space<vmem>>, vector<3x128xf32>
    tpu.vector_store %arg8[%c0_138, %c0_139], %184 {strides = array<i32>} : memref<128x128xf32, #tpu.memory_space<vmem>>, vector<3x128xf32>,
    %c16_140 = arith.constant 16 : index
    %c0_141 = arith.constant 0 : index
    %186 = tpu.strided_load %arg9[%c16_140, %c0_141] {strides = array<i32: 3, 1>} : memref<64x128xf32, #tpu.memory_space<vmem>>, vector<3x128xf32>
    %c17 = arith.constant 17 : index
    %c0_142 = arith.constant 0 : index
    %187 = tpu.strided_load %arg9[%c17, %c0_142] {strides = array<i32: 3, 1>} : memref<64x128xf32, #tpu.memory_space<vmem>>, vector<3x128xf32>
    %188 = arith.maximumf %186, %187 : vector<3x128xf32>
    %c18 = arith.constant 18 : index
    %c0_143 = arith.constant 0 : index
    %189 = tpu.strided_load %arg9[%c18, %c0_143] {strides = array<i32: 3, 1>} : memref<64x128xf32, #tpu.memory_space<vmem>>, vector<3x128xf32>
    %190 = arith.maximumf %188, %189 : vector<3x128xf32>
    %c8 = arith.constant 8 : index
    %c0_144 = arith.constant 0 : index
    %191 = vector.load %arg8[%c8, %c0_144] : memref<128x128xf32, #tpu.memory_space<vmem>>, vector<3x128xf32>
    tpu.vector_store %arg8[%c8, %c0_144], %190 {strides = array<i32>} : memref<128x128xf32, #tpu.memory_space<vmem>>, vector<3x128xf32>,
    %c32_145 = arith.constant 32 : index
    %c0_146 = arith.constant 0 : index
    %192 = tpu.strided_load %arg9[%c32_145, %c0_146] {strides = array<i32: 3, 1>} : memref<64x128xf32, #tpu.memory_space<vmem>>, vector<3x128xf32>
    %c33_147 = arith.constant 33 : index
    %c0_148 = arith.constant 0 : index
    %193 = tpu.strided_load %arg9[%c33_147, %c0_148] {strides = array<i32: 3, 1>} : memref<64x128xf32, #tpu.memory_space<vmem>>, vector<3x128xf32>
    %194 = arith.maximumf %192, %193 : vector<3x128xf32>
    %c34_149 = arith.constant 34 : index
    %c0_150 = arith.constant 0 : index
    %195 = tpu.strided_load %arg9[%c34_149, %c0_150] {strides = array<i32: 3, 1>} : memref<64x128xf32, #tpu.memory_space<vmem>>, vector<3x128xf32>
    %196 = arith.maximumf %194, %195 : vector<3x128xf32>
    %c16_151 = arith.constant 16 : index
    %c0_152 = arith.constant 0 : index
    %197 = vector.load %arg8[%c16_151, %c0_152] : memref<128x128xf32, #tpu.memory_space<vmem>>, vector<3x128xf32>
    tpu.vector_store %arg8[%c16_151, %c0_152], %196 {strides = array<i32>} : memref<128x128xf32, #tpu.memory_space<vmem>>, vector<3x128xf32>,
    %c48_153 = arith.constant 48 : index
    %c0_154 = arith.constant 0 : index
    %198 = tpu.strided_load %arg9[%c48_153, %c0_154] {strides = array<i32: 3, 1>} : memref<64x128xf32, #tpu.memory_space<vmem>>, vector<3x128xf32>
    %c49 = arith.constant 49 : index
    %c0_155 = arith.constant 0 : index
    %199 = tpu.strided_load %arg9[%c49, %c0_155] {strides = array<i32: 3, 1>} : memref<64x128xf32, #tpu.memory_space<vmem>>, vector<3x128xf32>
    %200 = arith.maximumf %198, %199 : vector<3x128xf32>
    %c50 = arith.constant 50 : index
    %c0_156 = arith.constant 0 : index
    %201 = tpu.strided_load %arg9[%c50, %c0_156] {strides = array<i32: 3, 1>} : memref<64x128xf32, #tpu.memory_space<vmem>>, vector<3x128xf32>
    %202 = arith.maximumf %200, %201 : vector<3x128xf32>
    %c24 = arith.constant 24 : index
    %c0_157 = arith.constant 0 : index
    %203 = vector.load %arg8[%c24, %c0_157] : memref<128x128xf32, #tpu.memory_space<vmem>>, vector<3x128xf32>
    tpu.vector_store %arg8[%c24, %c0_157], %202 {strides = array<i32>} : memref<128x128xf32, #tpu.memory_space<vmem>>, vector<3x128xf32>,
    %c0_158 = arith.constant 0 : index
    %c0_159 = arith.constant 0 : index
    %204 = vector.load %arg8[%c0_158, %c0_159] : memref<128x128xf32, #tpu.memory_space<vmem>>, vector<32x128xf32>
    %205 = arith.truncf %204 : vector<32x128xf32> to vector<32x128xbf16>
    %cst_160 = arith.constant dense<0.000000e+00> : vector<32x128xf32>
    %206 = tpu.matmul %205, %15, %cst_160 {dimension_numbers = #tpu.dot_dimension_numbers<[1], [0], [0], [1], [0, 0, 1, 1], [], []>} : vector<32x128xbf16>, vector<128x128xbf16>, vector<32x128xf32> -> vector<32x128xf32>
    %207 = vector.broadcast %5 : vector<1x128xf32> to vector<32x128xf32>
    %208 = arith.addf %206, %207 : vector<32x128xf32>
    %209 = arith.addf %208, %204 : vector<32x128xf32>
    %210 = vector.broadcast %6 : vector<1x128xf32> to vector<32x128xf32>
    %211 = arith.mulf %209, %210 : vector<32x128xf32>
    %212 = vector.broadcast %7 : vector<1x128xf32> to vector<32x128xf32>
    %213 = arith.addf %211, %212 : vector<32x128xf32>
    %cst_161 = arith.constant 0.000000e+00 : f32
    %214 = vector.broadcast %cst_161 : f32 to vector<32x128xf32>
    %215 = arith.maximumf %213, %214 : vector<32x128xf32>
    %216 = arith.truncf %215 : vector<32x128xf32> to vector<32x128xbf16>
    %cst_162 = arith.constant dense<0.000000e+00> : vector<32x128xf32>
    %217 = tpu.matmul %216, %15, %cst_162 {dimension_numbers = #tpu.dot_dimension_numbers<[1], [0], [0], [1], [0, 0, 1, 1], [], []>} : vector<32x128xbf16>, vector<128x128xbf16>, vector<32x128xf32> -> vector<32x128xf32>
    %218 = vector.broadcast %5 : vector<1x128xf32> to vector<32x128xf32>
    %219 = arith.addf %217, %218 : vector<32x128xf32>
    %220 = arith.addf %219, %208 : vector<32x128xf32>
    %cst_163 = arith.constant 0.000000e+00 : f32
    %221 = vector.broadcast %cst_163 : f32 to vector<32x128xf32>
    %222 = arith.maximumf %220, %221 : vector<32x128xf32>
    %223 = vector.broadcast %6 : vector<1x128xf32> to vector<32x128xf32>
    %224 = arith.mulf %222, %223 : vector<32x128xf32>
    %225 = vector.broadcast %7 : vector<1x128xf32> to vector<32x128xf32>
    %226 = arith.addf %224, %225 : vector<32x128xf32>
    %c0_164 = arith.constant 0 : index
    %c0_165 = arith.constant 0 : index
    %227 = vector.load %arg8[%c0_164, %c0_165] : memref<128x128xf32, #tpu.memory_space<vmem>>, vector<32x128xf32>
    tpu.vector_store %arg8[%c0_164, %c0_165], %226 {strides = array<i32>} : memref<128x128xf32, #tpu.memory_space<vmem>>, vector<32x128xf32>,
    %c0_166 = arith.constant 0 : index
    %c0_167 = arith.constant 0 : index
    %228 = tpu.strided_load %arg8[%c0_166, %c0_167] {strides = array<i32: 3, 1>} : memref<128x128xf32, #tpu.memory_space<vmem>>, vector<1x128xf32>
    %c1_168 = arith.constant 1 : index
    %c0_169 = arith.constant 0 : index
    %229 = tpu.strided_load %arg8[%c1_168, %c0_169] {strides = array<i32: 3, 1>} : memref<128x128xf32, #tpu.memory_space<vmem>>, vector<1x128xf32>
    %230 = arith.maximumf %228, %229 : vector<1x128xf32>
    %c2_170 = arith.constant 2 : index
    %c0_171 = arith.constant 0 : index
    %231 = tpu.strided_load %arg8[%c2_170, %c0_171] {strides = array<i32: 3, 1>} : memref<128x128xf32, #tpu.memory_space<vmem>>, vector<1x128xf32>
    %232 = arith.maximumf %230, %231 : vector<1x128xf32>
    %c0_172 = arith.constant 0 : index
    %c0_173 = arith.constant 0 : index
    %c0_174 = arith.constant 0 : index
    %233 = vector.load %arg6[%c0_172, %c0_173, %c0_174] : memref<4x1x128xf32, #tpu.memory_space<vmem>>, vector<1x1x128xf32>
    %234 = vector.shape_cast %233 : vector<1x1x128xf32> to vector<1x128xf32>
    %235 = vector.shape_cast %232 : vector<1x128xf32> to vector<1x1x128xf32>
    tpu.vector_store %arg6[%c0_172, %c0_173, %c0_174], %235 {strides = array<i32>} : memref<4x1x128xf32, #tpu.memory_space<vmem>>, vector<1x1x128xf32>,
    %c8_175 = arith.constant 8 : index
    %c0_176 = arith.constant 0 : index
    %236 = tpu.strided_load %arg8[%c8_175, %c0_176] {strides = array<i32: 3, 1>} : memref<128x128xf32, #tpu.memory_space<vmem>>, vector<1x128xf32>
    %c9 = arith.constant 9 : index
    %c0_177 = arith.constant 0 : index
    %237 = tpu.strided_load %arg8[%c9, %c0_177] {strides = array<i32: 3, 1>} : memref<128x128xf32, #tpu.memory_space<vmem>>, vector<1x128xf32>
    %238 = arith.maximumf %236, %237 : vector<1x128xf32>
    %c10 = arith.constant 10 : index
    %c0_178 = arith.constant 0 : index
    %239 = tpu.strided_load %arg8[%c10, %c0_178] {strides = array<i32: 3, 1>} : memref<128x128xf32, #tpu.memory_space<vmem>>, vector<1x128xf32>
    %240 = arith.maximumf %238, %239 : vector<1x128xf32>
    %c1_179 = arith.constant 1 : index
    %c0_180 = arith.constant 0 : index
    %c0_181 = arith.constant 0 : index
    %241 = vector.load %arg6[%c1_179, %c0_180, %c0_181] : memref<4x1x128xf32, #tpu.memory_space<vmem>>, vector<1x1x128xf32>
    %242 = vector.shape_cast %241 : vector<1x1x128xf32> to vector<1x128xf32>
    %243 = vector.shape_cast %240 : vector<1x128xf32> to vector<1x1x128xf32>
    tpu.vector_store %arg6[%c1_179, %c0_180, %c0_181], %243 {strides = array<i32>} : memref<4x1x128xf32, #tpu.memory_space<vmem>>, vector<1x1x128xf32>,
    %c16_182 = arith.constant 16 : index
    %c0_183 = arith.constant 0 : index
    %244 = tpu.strided_load %arg8[%c16_182, %c0_183] {strides = array<i32: 3, 1>} : memref<128x128xf32, #tpu.memory_space<vmem>>, vector<1x128xf32>
    %c17_184 = arith.constant 17 : index
    %c0_185 = arith.constant 0 : index
    %245 = tpu.strided_load %arg8[%c17_184, %c0_185] {strides = array<i32: 3, 1>} : memref<128x128xf32, #tpu.memory_space<vmem>>, vector<1x128xf32>
    %246 = arith.maximumf %244, %245 : vector<1x128xf32>
    %c18_186 = arith.constant 18 : index
    %c0_187 = arith.constant 0 : index
    %247 = tpu.strided_load %arg8[%c18_186, %c0_187] {strides = array<i32: 3, 1>} : memref<128x128xf32, #tpu.memory_space<vmem>>, vector<1x128xf32>
    %248 = arith.maximumf %246, %247 : vector<1x128xf32>
    %c2_188 = arith.constant 2 : index
    %c0_189 = arith.constant 0 : index
    %c0_190 = arith.constant 0 : index
    %249 = vector.load %arg6[%c2_188, %c0_189, %c0_190] : memref<4x1x128xf32, #tpu.memory_space<vmem>>, vector<1x1x128xf32>
    %250 = vector.shape_cast %249 : vector<1x1x128xf32> to vector<1x128xf32>
    %251 = vector.shape_cast %248 : vector<1x128xf32> to vector<1x1x128xf32>
    tpu.vector_store %arg6[%c2_188, %c0_189, %c0_190], %251 {strides = array<i32>} : memref<4x1x128xf32, #tpu.memory_space<vmem>>, vector<1x1x128xf32>,
    %c24_191 = arith.constant 24 : index
    %c0_192 = arith.constant 0 : index
    %252 = tpu.strided_load %arg8[%c24_191, %c0_192] {strides = array<i32: 3, 1>} : memref<128x128xf32, #tpu.memory_space<vmem>>, vector<1x128xf32>
    %c25 = arith.constant 25 : index
    %c0_193 = arith.constant 0 : index
    %253 = tpu.strided_load %arg8[%c25, %c0_193] {strides = array<i32: 3, 1>} : memref<128x128xf32, #tpu.memory_space<vmem>>, vector<1x128xf32>
    %254 = arith.maximumf %252, %253 : vector<1x128xf32>
    %c26 = arith.constant 26 : index
    %c0_194 = arith.constant 0 : index
    %255 = tpu.strided_load %arg8[%c26, %c0_194] {strides = array<i32: 3, 1>} : memref<128x128xf32, #tpu.memory_space<vmem>>, vector<1x128xf32>
    %256 = arith.maximumf %254, %255 : vector<1x128xf32>
    %c3_195 = arith.constant 3 : index
    %c0_196 = arith.constant 0 : index
    %c0_197 = arith.constant 0 : index
    %257 = vector.load %arg6[%c3_195, %c0_196, %c0_197] : memref<4x1x128xf32, #tpu.memory_space<vmem>>, vector<1x1x128xf32>
    %258 = vector.shape_cast %257 : vector<1x1x128xf32> to vector<1x128xf32>
    %259 = vector.shape_cast %256 : vector<1x128xf32> to vector<1x1x128xf32>
    tpu.vector_store %arg6[%c3_195, %c0_196, %c0_197], %259 {strides = array<i32>} : memref<4x1x128xf32, #tpu.memory_space<vmem>>, vector<1x1x128xf32>,
    return
  }
  func.func @transform_0(%arg0: i32) -> (i32, i32, i32) {
    %c0_i32 = arith.constant 0 : i32
    %c0_i32_0 = arith.constant 0 : i32
    %c0_i32_1 = arith.constant 0 : i32
    return %arg0, %c0_i32, %c0_i32_0 : i32, i32, i32
  }
  func.func @transform_1(%arg0: i32) -> (i32, i32, i32) {
    %c0_i32 = arith.constant 0 : i32
    %c0_i32_0 = arith.constant 0 : i32
    %c0_i32_1 = arith.constant 0 : i32
    %c0_i32_2 = arith.constant 0 : i32
    return %c0_i32, %c0_i32_0, %c0_i32_1 : i32, i32, i32
  }
  func.func @transform_2(%arg0: i32) -> (i32, i32) {
    %c0_i32 = arith.constant 0 : i32
    %c0_i32_0 = arith.constant 0 : i32
    %c0_i32_1 = arith.constant 0 : i32
    return %c0_i32, %c0_i32_0 : i32, i32
  }
  func.func @transform_3(%arg0: i32) -> (i32, i32) {
    %c0_i32 = arith.constant 0 : i32
    %c0_i32_0 = arith.constant 0 : i32
    %c0_i32_1 = arith.constant 0 : i32
    return %c0_i32, %c0_i32_0 : i32, i32
  }
  func.func @transform_4(%arg0: i32) -> (i32, i32) {
    %c0_i32 = arith.constant 0 : i32
    %c0_i32_0 = arith.constant 0 : i32
    %c0_i32_1 = arith.constant 0 : i32
    return %c0_i32, %c0_i32_0 : i32, i32
  }
  func.func @transform_5(%arg0: i32) -> (i32, i32, i32) {
    %c0_i32 = arith.constant 0 : i32
    %c0_i32_0 = arith.constant 0 : i32
    %c0_i32_1 = arith.constant 0 : i32
    return %arg0, %c0_i32, %c0_i32_0 : i32, i32, i32
  }
}

</mosaic_0001>

<bundles_post_ra>
// kernel: convs_layer_forward.1
= control target key start
LH: loop header
LB: loop body
LE: loop exit
PB: predicated region body
PF: predicated region fallthrough
CT: control target
= control target key end

     0   :  { %10 = vsyncpa [#allocation6], 0  ;;  %s4962_s0 = inlined_call_operand.vmem [shape: f32[8,83,32], index: 0, kind: input, shape index: {}]   ;;  %s4963_s1 = inlined_call_operand.vmem [shape: bf16[3,32,128], index: 1, kind: input, shape index: {}]   ;;  %s4964_s2 = inlined_call_operand.vmem [shape: bf16[128,128], index: 2, kind: input, shape index: {}]   ;;  %s4965_s3 = inlined_call_operand.vmem [shape: bf16[128,128], index: 3, kind: input, shape index: {}]   ;;  %s4966_s4 = inlined_call_operand.vmem [shape: f32[8,128], index: 4, kind: input, shape index: {}]   ;;  %s4967_s5 = inlined_call_operand.hbm [shape: f32[8,1,128], index: 5, kind: output, shape index: {}]  }
   0x1   :  { %12 = vsyncpa [#allocation6 + $0x1], 0  ;;  %s3976_s18 = smov 0   ;;  %s3978_s19 = smov 0  }
   0x2   :  { %s3980_s20 = smov 0   ;;  %s3982_s21 = smov 0  }
   0x3 LB: > { %s3997_s22 = sadd.s32 4294967295, %s3941_s21   ;;  %s3017_s23 = sadd.s32 4294967294, %s3941_s21   ;;  %s3941_s21 = sphi %s3982_s21, %s4973_s21   ;;  %s3937_s20 = sphi %s3980_s20, %s4972_s20   ;;  %s3933_s19 = sphi %s3978_s19, %s4971_s19   ;;  %s3929_s18 = sphi %s3976_s18, %s4970_s18  }
   0x4   : > { %s4001_s24 = sadd.s32 1, %s3941_s21   ;;  %s135_s25 = sadd.s32 1, %s3937_s20 }
   0x5   : > { %s132_s26 = ssub.s32 %s3941_s21, %s4001_s24  ;;  %p145_p0 = scmp.ne.s32.totalorder %s3937_s20, %s3933_s19 }
   0x6   : > { %p133_p1 = scmp.eq.s32.totalorder %s132_s26, 0  ;;  %p146_p2 = scmp.eq.s32.totalorder %s3997_s22, 1 }
   0x7   : > { %p151_p3 = scmp.ne.s32.totalorder %s3933_s19, %s3929_s18  ;;  %p152_p4 = scmp.eq.s32.totalorder %s3017_s23, 1 }
   0x8   : > { %s4012_s27 = scalar_select %p133_p1, %s3937_s20, %s135_s25  }
   0x9   : > { %p4014_p5 = por %p146_p2, %p145_p0  ;;  %p4018_p6 = por %p152_p4, %p151_p3 }
   0xa   : > { %p3020_p7 = scmp.ge.s32.totalorder %s3941_s21, 1  ;;  %p192_p8 = scmp.lt.s32.totalorder %s3941_s21, 3 }
   0xc   : > { %p193_p9 = pnand %p3020_p7, %p192_p8 }
   0xd   : > { %v4027_v0 = vld [vmem:[%s4963_s1 + $0x10] sm:$0xff] (!%p193_p9)   ;;  %s3022_s7 = sshll.u32 (!%p193_p9), %s3997_s22, 2  ;;  %v4033_v1 = vld [vmem:[%s4963_s1 + $0x18] sm:$0xff] (!%p193_p9)   ;;  %v4044_v2 = vld [vmem:[%s4963_s1] sm:$0xff] (!%p193_p9)   ;;  %vm323_vm0 = vcmask (!%p193_p9), 261120   ;;  %s218_s10 = sand.u32 (!%p193_p9), 1, %s3933_s19  }
   0xe   : > { %196 = sbr.rel (%p193_p9) target bundleno = 1843 (0x733), region = 40  ;;  %p222_p10 = scmp.lt.s32.totalorder (!%p193_p9), %s3022_s7, 7  ;;  %3406 = vmatprep.subr.bf16.mxu0 (!%p193_p9), %v4027_v0  ;;  %3454 = vmatprep.subr.bf16.mxu1 (!%p193_p9), %v4027_v0  ;;  %v4064_v10 = vld [vmem:[%s4963_s1 + $0x8] sm:$0xff] (!%p193_p9)   ;;  %v4078_v22 = vld [vmem:[%s4963_s1 + $0x20] sm:$0xff] (!%p193_p9)  }
   0xf   : > { %3407 = vmatpush3.bf16.msra.mxu0 (!%p193_p9), %v4027_v0  ;;  %3455 = vmatpush3.bf16.msra.mxu1 (!%p193_p9), %v4027_v0  ;;  %v4124_v57 = vld [vmem:[%s4963_s1 + $0x28] sm:$0xff] (!%p193_p9)   ;;  %s3021_s11 = sshll.u32 (!%p193_p9), %s218_s10, 2  ;;  %s3943_s25 = smov (!%p193_p9), [#allocation5]  }
  0x10   : > { %3408 = vmatprep.subr.bf16.mxu0 (!%p193_p9), %v4033_v1  ;;  %3456 = vmatprep.subr.bf16.mxu1 (!%p193_p9), %v4033_v1  ;;  %s220_s13 = scalar_lea.vmem (!%p193_p9), [#allocation5], %s3021_s11  ;;  %s3883_s26 = sshll.u32 (!%p193_p9), %s3943_s25, 4  ;;  %s3884_s26 = int_to_ptr.vmem [resolvable:$false] %s3883_s26 }
  0x11   : > { %s2955_s14 = sshll.u32 (!%p193_p9), %s220_s13, 4  ;;  %s3885_s30 = scalar_lea.vmem (!%p193_p9), %s3884_s26, 128  ;;  %s4917_s14 = int_to_ptr.vmem [resolvable:$true] %s2955_s14 }
  0x12   : > { %s3879_s23 = scalar_lea.vmem (!%p193_p9), %s4917_s14, 64  ;;  %p3886_p0 = scmp.lt.s32.totalorder (!%p193_p9), %s4917_s14, %s3884_s26 }
  0x13   : > { %3409 = vmatpush3.bf16.msra.mxu0 (!%p193_p9), %v4033_v1  ;;  %3457 = vmatpush3.bf16.msra.mxu1 (!%p193_p9), %v4033_v1  ;;  %p3880_p11 = scmp.ne.s32.totalorder (!%p193_p9), %s4917_s14, %s3879_s23  ;;  %p3887_p1 = scmp.lt.s32.totalorder (!%p193_p9), %s3885_s30, %s3879_s23 }
  0x14   : > { %3422 = vmatprep.subr.bf16.mxu0 (!%p193_p9), %v4044_v2  ;;  %3470 = vmatprep.subr.bf16.mxu1 (!%p193_p9), %v4044_v2 }
  0x15   : > { %s4975_s7 = smov (!%p222_p10, %s3022_s7), 7  ;;  %p3881_p12 = pnand %p3880_p11, %p4014_p5 }
  0x16   : > { %s3814_s12 = smul.u32 88, %s4975_s7  ;;  %p3888_p2 = por %p3887_p1, %p3886_p0 }
  0x17   : > { %p3882_p13 = pneg %p3881_p12 }
  0x18   : > { %s4051_s15 = scalar_lea.vmem %s4962_s0, %s3814_s12  ;;  %s3233_s12 = sshll.u32 %s3997_s22, 6 }
  0x19   : > { %v294_v3 = vld [vmem:[%s4051_s15 + $0x1] sm:$0xff]  ;;  %v295_v4 = vld [vmem:[%s4051_s15 + $0x9] sm:$0xff]  ;;  %v3067_v5 = vld [vmem:[%s4051_s15 + $0x59] sm:$0xff]  ;;  %s4915_s17 = scalar_lea.hbm %s4967_s5, %s3233_s12  ;;  %s4921_s22 = scalar_lea.sflag [#allocation6], %s218_s10 }
  0x1a   : > { %v305_v6 = vpack.c.bf16 %v295_v4, %v294_v3  ;;  %v3068_v7 = vld [vmem:[%s4051_s15 + $0x61] sm:$0xff]  ;;  %v296_v8 = vld [vmem:[%s4051_s15 + $0x11] sm:$0xff]  ;;  %v297_v9 = vld [vmem:[%s4051_s15 + $0x19] sm:$0xff]  ;;  %p3889_p3 = pnand %p3888_p2, %p3882_p13 }
  0x1b   : > { %v760_v11 = vpack.c.bf16 %v3068_v7, %v3067_v5  ;;  %v306_v12 = vpack.c.bf16 %v297_v9, %v296_v8  ;;  %v3069_v13 = vld [vmem:[%s4051_s15 + $0x69] sm:$0xff]  ;;  %v3070_v14 = vld [vmem:[%s4051_s15 + $0x71] sm:$0xff]  ;;  %v298_v15 = vld [vmem:[%s4051_s15 + $0x21] sm:$0xff] }
  0x1c   : > { %3410 = vmatprep.mubr.msk.bf16.mxu0 %vm323_vm0, %v305_v6  ;;  %v761_v16 = vpack.c.bf16 %v3070_v14, %v3069_v13  ;;  %v299_v17 = vld [vmem:[%s4051_s15 + $0x29] sm:$0xff]  ;;  %v3071_v18 = vld [vmem:[%s4051_s15 + $0x79] sm:$0xff]  ;;  %v3072_v19 = vld [vmem:[%s4051_s15 + $0x81] sm:$0xff] }
  0x1d   : > { %3458 = vmatprep.mubr.msk.bf16.mxu1 %vm323_vm0, %v760_v11  ;;  %3411 = vmatmul.mubr.msk.bf16.vlgmr.msra.gmra.mrb[0].mxu0 %vm323_vm0, %v306_v12  ;;  %v307_v20 = vpack.c.bf16 %v299_v17, %v298_v15  ;;  %v762_v21 = vpack.c.bf16 %v3072_v19, %v3071_v18  ;;  %v300_v23 = vld [vmem:[%s4051_s15 + $0x31] sm:$0xff]  ;;  %v301_v24 = vld [vmem:[%s4051_s15 + $0x39] sm:$0xff]  ;;  %v3073_v25 = vld [vmem:[%s4051_s15 + $0x89] sm:$0xff] }
  0x1e   : > { %3423 = vmatpush3.bf16.msra.mxu0 %v4044_v2  ;;  %3459 = vmatmul.mubr.msk.bf16.vlgmr.msra.gmra.mrb[0].mxu1 %vm323_vm0, %v761_v16  ;;  %v3074_v26 = vld [vmem:[%s4051_s15 + $0x91] sm:$0xff]  ;;  %v302_v27 = vld [vmem:[%s4051_s15 + $0x41] sm:$0xff]  ;;  %v303_v28 = vld [vmem:[%s4051_s15 + $0x49] sm:$0xff]  ;;  %v308_v31 = vpack.c.bf16 %v301_v24, %v300_v23 }
  0x1f   : > { %3414 = vmatprep.mubr.msk.bf16.mxu0 %vm323_vm0, %v307_v20  ;;  %3462 = vmatprep.mubr.msk.bf16.mxu1 %vm323_vm0, %v762_v21  ;;  %v3075_v29 = vld [vmem:[%s4051_s15 + $0x99] sm:$0xff]  ;;  %v3076_v30 = vld [vmem:[%s4051_s15 + $0xa1] sm:$0xff]  ;;  %v763_v32 = vpack.c.bf16 %v3074_v26, %v3073_v25  ;;  %v309_v33 = vpack.c.bf16 %v303_v28, %v302_v27  ;;  %v304_v35 = vld [vmem:[%s4051_s15 + $0x51] sm:$0x1] }
  0x20   : > { %3471 = vmatpush3.bf16.msra.mxu1 %v4044_v2  ;;  %3424 = vmatprep.subr.bf16.mxu0 %v4064_v10  ;;  %v764_v34 = vpack.c.bf16 %v3076_v30, %v3075_v29  ;;  %v3077_v36 = vld [vmem:[%s4051_s15 + $0xa9] sm:$0x1]  ;;  %v277_v37 = vld [vmem:[%s4051_s15] sm:$0xff]  ;;  %v3056_v39 = vld [vmem:[%s4051_s15 + $0x58] sm:$0xff]  ;;  %v310_v41 = vpack.c.bf16 %v304_v35, %v304_v35 }
  0x21   : > { %3472 = vmatprep.subr.bf16.mxu1 %v4064_v10  ;;  %v278_v38 = vld [vmem:[%s4051_s15 + $0x8] sm:$0xff]  ;;  %v3057_v40 = vld [vmem:[%s4051_s15 + $0x60] sm:$0xff]  ;;  %v765_v42 = vpack.c.bf16 %v3077_v36, %v3077_v36  ;;  %v279_v45 = vld [vmem:[%s4051_s15 + $0x10] sm:$0xff] }
  0x22   : > { %3425 = vmatpush3.bf16.msra.mxu0 %v4064_v10  ;;  %v288_v43 = vpack.c.bf16 %v278_v38, %v277_v37  ;;  %v743_v44 = vpack.c.bf16 %v3057_v40, %v3056_v39  ;;  %v280_v46 = vld [vmem:[%s4051_s15 + $0x18] sm:$0xff]  ;;  %v3058_v47 = vld [vmem:[%s4051_s15 + $0x68] sm:$0xff]  ;;  %v3059_v48 = vld [vmem:[%s4051_s15 + $0x70] sm:$0xff] }
  0x23   : > { %3438 = vmatprep.subr.bf16.mxu0 %v4078_v22  ;;  %v281_v49 = vld [vmem:[%s4051_s15 + $0x20] sm:$0xff]  ;;  %v282_v50 = vld [vmem:[%s4051_s15 + $0x28] sm:$0xff]  ;;  %v3060_v51 = vld [vmem:[%s4051_s15 + $0x78] sm:$0xff]  ;;  %v289_v53 = vpack.c.bf16 %v280_v46, %v279_v45  ;;  %v744_v54 = vpack.c.bf16 %v3059_v48, %v3058_v47 }
  0x24   : > { %3473 = vmatpush3.bf16.msra.mxu1 %v4064_v10  ;;  %v3061_v52 = vld [vmem:[%s4051_s15 + $0x80] sm:$0xff]  ;;  %v290_v55 = vpack.c.bf16 %v282_v50, %v281_v49  ;;  %v283_v58 = vld [vmem:[%s4051_s15 + $0x30] sm:$0xff]  ;;  %v284_v59 = vld [vmem:[%s4051_s15 + $0x38] sm:$0xff] }
  0x25   : > { %3415 = vmatmul.mubr.msk.bf16.gmra.mrb[4].mxu0 %vm323_vm0, %v308_v31  ;;  %3486 = vmatprep.subr.bf16.mxu1 %v4078_v22  ;;  %v745_v56 = vpack.c.bf16 %v3061_v52, %v3060_v51  ;;  %v3062_v60 = vld [vmem:[%s4051_s15 + $0x88] sm:$0xff]  ;;  %v3063_v61 = vld [vmem:[%s4051_s15 + $0x90] sm:$0xff]  ;;  %v285_v62 = vld [vmem:[%s4051_s15 + $0x40] sm:$0xff]  ;;  %v291_v5 = vpack.c.bf16 %v284_v59, %v283_v58 }
  0x26   : > { %3463 = vmatmul.mubr.msk.bf16.gmra.mrb[4].mxu1 %vm323_vm0, %v763_v32  ;;  %3418 = vmatprep.mubr.msk.bf16.mxu0 %vm323_vm0, %v309_v33  ;;  %v286_v63 = vld [vmem:[%s4051_s15 + $0x48] sm:$0xff]  ;;  %v3064_v3 = vld [vmem:[%s4051_s15 + $0x98] sm:$0xff]  ;;  %v3065_v4 = vld [vmem:[%s4051_s15 + $0xa0] sm:$0xff]  ;;  %v746_v6 = vpack.c.bf16 %v3063_v61, %v3062_v60 }
  0x27   : > { %3466 = vmatprep.mubr.msk.bf16.mxu1 %vm323_vm0, %v764_v34  ;;  %v292_v7 = vpack.c.bf16 %v286_v63, %v285_v62  ;;  %v747_v8 = vpack.c.bf16 %v3065_v4, %v3064_v3  ;;  %v287_v9 = vld [vmem:[%s4051_s15 + $0x50] sm:$0x1]  ;;  %v3066_v11 = vld [vmem:[%s4051_s15 + $0xa8] sm:$0x1]  ;;  %v3090_v14 = vld [vmem:[%s4051_s15 + $0x5a] sm:$0xff] }
  0x28   : > { %v532_v12 = vld [vmem:[%s4051_s15 + $0x2] sm:$0xff]  ;;  %v533_v13 = vld [vmem:[%s4051_s15 + $0xa] sm:$0xff]  ;;  %v293_v16 = vpack.c.bf16 %v287_v9, %v287_v9  ;;  %v748_v17 = vpack.c.bf16 %v3066_v11, %v3066_v11  ;;  %v534_v20 = vld [vmem:[%s4051_s15 + $0x12] sm:$0xff] }
  0x29   : > { %v3091_v15 = vld [vmem:[%s4051_s15 + $0x62] sm:$0xff]  ;;  %v543_v18 = vpack.c.bf16 %v533_v13, %v532_v12  ;;  %v535_v21 = vld [vmem:[%s4051_s15 + $0x1a] sm:$0xff]  ;;  %v3092_v23 = vld [vmem:[%s4051_s15 + $0x6a] sm:$0xff] }
  0x2a   : > { %v973_v19 = vpack.c.bf16 %v3091_v15, %v3090_v14  ;;  %v3093_v24 = vld [vmem:[%s4051_s15 + $0x72] sm:$0xff]  ;;  %v536_v25 = vld [vmem:[%s4051_s15 + $0x22] sm:$0xff]  ;;  %v537_v26 = vld [vmem:[%s4051_s15 + $0x2a] sm:$0xff]  ;;  %v544_v29 = vpack.c.bf16 %v535_v21, %v534_v20 }
  0x2b   : > { %v3094_v27 = vld [vmem:[%s4051_s15 + $0x7a] sm:$0xff]  ;;  %v3095_v28 = vld [vmem:[%s4051_s15 + $0x82] sm:$0xff]  ;;  %v974_v30 = vpack.c.bf16 %v3093_v24, %v3092_v23  ;;  %v545_v31 = vpack.c.bf16 %v537_v26, %v536_v25  ;;  %v538_v33 = vld [vmem:[%s4051_s15 + $0x32] sm:$0xff] }
  0x2c   : > { %v975_v32 = vpack.c.bf16 %v3095_v28, %v3094_v27  ;;  %v539_v34 = vld [vmem:[%s4051_s15 + $0x3a] sm:$0xff]  ;;  %v3096_v35 = vld [vmem:[%s4051_s15 + $0x8a] sm:$0xff]  ;;  %v3097_v36 = vld [vmem:[%s4051_s15 + $0x92] sm:$0xff] }
  0x2d   : > { %3419 = vmatmul.mubr.msk.bf16.gmra.mrb[8].mxu0 %vm323_vm0, %v310_v41  ;;  %v540_v37 = vld [vmem:[%s4051_s15 + $0x42] sm:$0xff]  ;;  %v541_v38 = vld [vmem:[%s4051_s15 + $0x4a] sm:$0xff]  ;;  %v3098_v39 = vld [vmem:[%s4051_s15 + $0x9a] sm:$0xff]  ;;  %v546_v41 = vpack.c.bf16 %v539_v34, %v538_v33 }
  0x2e   : > { %3467 = vmatmul.mubr.msk.bf16.gmra.mrb[8].mxu1 %vm323_vm0, %v765_v42  ;;  %3426 = vmatprep.mubr.msk.bf16.mxu0 %vm323_vm0, %v288_v43  ;;  %v3099_v40 = vld [vmem:[%s4051_s15 + $0xa2] sm:$0xff]  ;;  %v976_v42 = vpack.c.bf16 %v3097_v36, %v3096_v35  ;;  %v547_v43 = vpack.c.bf16 %v541_v38, %v540_v37  ;;  %v3100_v45 = vld [vmem:[%s4051_s15 + $0xaa] sm:$0x1]  ;;  %v3118_v46 = vld [vmem:[%s4051_s15 + $0xb1] sm:$0xff] }
  0x2f   : > { %3474 = vmatprep.mubr.msk.bf16.mxu1 %vm323_vm0, %v743_v44  ;;  %v977_v44 = vpack.c.bf16 %v3099_v40, %v3098_v39  ;;  %v3119_v47 = vld [vmem:[%s4051_s15 + $0xb9] sm:$0xff]  ;;  %v3170_v48 = vld [vmem:[%s4051_s15 + $0x111] sm:$0xff]  ;;  %v978_v50 = vpack.c.bf16 %v3100_v45, %v3100_v45  ;;  %v3173_v60 = vld [vmem:[%s4051_s15 + $0x129] sm:$0xff] }
  0x30   : > { %v1175_v51 = vpack.c.bf16 %v3119_v47, %v3118_v46  ;;  %v3122_v58 = vld [vmem:[%s4051_s15 + $0xd1] sm:$0xff]  ;;  %v3123_v59 = vld [vmem:[%s4051_s15 + $0xd9] sm:$0xff]  ;;  %v3177_v12 = vld [vmem:[%s4051_s15 + $0x149] sm:$0xff] }
  0x31   : > { %v3174_v61 = vld [vmem:[%s4051_s15 + $0x131] sm:$0xff]  ;;  %v1177_v3 = vpack.c.bf16 %v3123_v59, %v3122_v58  ;;  %v3127_v11 = vld [vmem:[%s4051_s15 + $0xf9] sm:$0xff]  ;;  %v3110_v28 = vld [vmem:[%s4051_s15 + $0xc8] sm:$0xff] }
  0x32   : > { %v1580_v4 = vpack.c.bf16 %v3174_v61, %v3173_v60  ;;  %v3126_v9 = vld [vmem:[%s4051_s15 + $0xf1] sm:$0xff]  ;;  %v3109_v27 = vld [vmem:[%s4051_s15 + $0xc0] sm:$0xff]  ;;  %v3162_v33 = vld [vmem:[%s4051_s15 + $0x128] sm:$0xff] }
  0x33   : > { %v3178_v13 = vld [vmem:[%s4051_s15 + $0x151] sm:$0xff]  ;;  %v1159_v35 = vpack.c.bf16 %v3110_v28, %v3109_v27  ;;  %v3113_v39 = vld [vmem:[%s4051_s15 + $0xe0] sm:$0xff]  ;;  %v3114_v40 = vld [vmem:[%s4051_s15 + $0xe8] sm:$0xff] }
  0x34   : > { %v3108_v20 = vld [vmem:[%s4051_s15 + $0xb8] sm:$0xff]  ;;  %v3159_v21 = vld [vmem:[%s4051_s15 + $0x110] sm:$0xff]  ;;  %v1161_v46 = vpack.c.bf16 %v3114_v40, %v3113_v39  ;;  %v3143_v58 = vld [vmem:[%s4051_s15 + $0xc2] sm:$0xff] }
  0x35   : > { %3427 = vmatmul.mubr.msk.bf16.vlgmr.msra.gmra.mrb[0].mxu0 %vm323_vm0, %v289_v53  ;;  %v3120_v53 = vld [vmem:[%s4051_s15 + $0xc1] sm:$0xff]  ;;  %v3163_v34 = vld [vmem:[%s4051_s15 + $0x130] sm:$0xff]  ;;  %v3865_v28 = vld [vmem:[%s4964_s2 + $0x18] sm:$0xff]  }
  0x36   : > { %3439 = vmatpush3.bf16.msra.mxu0 %v4078_v22  ;;  %3475 = vmatmul.mubr.msk.bf16.vlgmr.msra.gmra.mrb[0].mxu1 %vm323_vm0, %v744_v54  ;;  %v3121_v54 = vld [vmem:[%s4051_s15 + $0xc9] sm:$0xff]  ;;  %v1563_v38 = vpack.c.bf16 %v3163_v34, %v3162_v33  ;;  %v3194_v60 = vld [vmem:[%s4051_s15 + $0x11a] sm:$0xff] }
  0x37   : > { %3430 = vmatprep.mubr.msk.bf16.mxu0 %vm323_vm0, %v290_v55  ;;  %3478 = vmatprep.mubr.msk.bf16.mxu1 %vm323_vm0, %v745_v56  ;;  %v3171_v55 = vld [vmem:[%s4051_s15 + $0x119] sm:$0xff]  ;;  %v3172_v56 = vld [vmem:[%s4051_s15 + $0x121] sm:$0xff]  ;;  %v1176_v62 = vpack.c.bf16 %v3121_v54, %v3120_v53  ;;  %v3167_v45 = vld [vmem:[%s4051_s15 + $0x150] sm:$0xff] }
  0x38   : > { %3487 = vmatpush3.bf16.msra.mxu1 %v4078_v22  ;;  %3440 = vmatprep.subr.bf16.mxu0 %v4124_v57  ;;  %v1579_v63 = vpack.c.bf16 %v3172_v56, %v3171_v55  ;;  %v3144_v59 = vld [vmem:[%s4051_s15 + $0xca] sm:$0xff]  ;;  %v3195_v61 = vld [vmem:[%s4051_s15 + $0x122] sm:$0xff] }
  0x39   : > { %3488 = vmatprep.subr.bf16.mxu1 %v4124_v57  ;;  %v3864_v27 = vld [vmem:[%s4964_s2 + $0x10] sm:$0xff]  }
  0x3a   : > { %3441 = vmatpush3.bf16.msra.mxu0 %v4124_v57 }
  0x3b   : > { %3502 = vmatprep.subr.bf16.mxu0 %v4027_v0 }
  0x3c   : > { %3489 = vmatpush3.bf16.msra.mxu1 %v4124_v57 }
  0x3d   : > { %3431 = vmatmul.mubr.msk.bf16.gmra.mrb[4].mxu0 %vm323_vm0, %v291_v5  ;;  %3550 = vmatprep.subr.bf16.mxu1 %v4027_v0  ;;  %v3124_v5 = vld [vmem:[%s4051_s15 + $0xe1] sm:$0xff] }
  0x3e   : > { %3479 = vmatmul.mubr.msk.bf16.gmra.mrb[4].mxu1 %vm323_vm0, %v746_v6  ;;  %3434 = vmatprep.mubr.msk.bf16.mxu0 %vm323_vm0, %v292_v7  ;;  %v3125_v6 = vld [vmem:[%s4051_s15 + $0xe9] sm:$0xff]  ;;  %v3175_v7 = vld [vmem:[%s4051_s15 + $0x139] sm:$0xff] }
  0x3f   : > { %3482 = vmatprep.mubr.msk.bf16.mxu1 %vm323_vm0, %v747_v8  ;;  %v3176_v8 = vld [vmem:[%s4051_s15 + $0x141] sm:$0xff]  ;;  %v1178_v14 = vpack.c.bf16 %v3125_v6, %v3124_v5  ;;  %v1389_v5 = vpack.c.bf16 %v3144_v59, %v3143_v58  ;;  %v1792_v6 = vpack.c.bf16 %v3195_v61, %v3194_v60 }
  0x40   : > { %v1581_v15 = vpack.c.bf16 %v3176_v8, %v3175_v7 }
  0x45   : > { %3435 = vmatmul.mubr.msk.bf16.gmra.mrb[12].mxu0 %vm323_vm0, %v293_v16  ;;  %v1179_v16 = vpack.c.bf16 %v3127_v11, %v3126_v9  ;;  %v3147_v9 = vld [vmem:[%s4051_s15 + $0xe2] sm:$0xff]  ;;  %v3148_v11 = vld [vmem:[%s4051_s15 + $0xea] sm:$0xff] }
  0x46   : > { %3483 = vmatmul.mubr.msk.bf16.gmra.mrb[12].mxu1 %vm323_vm0, %v748_v17  ;;  %3442 = vmatprep.mubr.msk.bf16.mxu0 %vm323_vm0, %v543_v18  ;;  %v1582_v17 = vpack.c.bf16 %v3178_v13, %v3177_v12  ;;  %v3179_v18 = vld [vmem:[%s4051_s15 + $0x159] sm:$0x1]  ;;  %v3198_v12 = vld [vmem:[%s4051_s15 + $0x13a] sm:$0xff]  ;;  %v3199_v13 = vld [vmem:[%s4051_s15 + $0x142] sm:$0xff] }
  0x47   : > { %3490 = vmatprep.mubr.msk.bf16.mxu1 %vm323_vm0, %v973_v19  ;;  %v3107_v19 = vld [vmem:[%s4051_s15 + $0xb0] sm:$0xff]  ;;  %v1583_v24 = vpack.c.bf16 %v3179_v18, %v3179_v18  ;;  %v1794_v18 = vpack.c.bf16 %v3199_v13, %v3198_v12 }
  0x48   : > { %v1158_v25 = vpack.c.bf16 %v3108_v20, %v3107_v19 }
  0x4d   : > { %3443 = vmatmul.mubr.msk.bf16.vlgmr.msra.gmra.mrb[0].mxu0 %vm323_vm0, %v544_v29  ;;  %v3160_v29 = vld [vmem:[%s4051_s15 + $0x118] sm:$0xff] }
  0x4e   : > { %3491 = vmatmul.mubr.msk.bf16.vlgmr.msra.gmra.mrb[0].mxu1 %vm323_vm0, %v974_v30  ;;  %3503 = vmatpush3.bf16.msra.mxu0 %v4027_v0  ;;  %v3161_v30 = vld [vmem:[%s4051_s15 + $0x120] sm:$0xff] }
  0x4f   : > { %3446 = vmatprep.mubr.msk.bf16.mxu0 %vm323_vm0, %v545_v31  ;;  %3494 = vmatprep.mubr.msk.bf16.mxu1 %vm323_vm0, %v975_v32  ;;  %v3111_v31 = vld [vmem:[%s4051_s15 + $0xd0] sm:$0xff]  ;;  %v3112_v32 = vld [vmem:[%s4051_s15 + $0xd8] sm:$0xff]  ;;  %v1562_v36 = vpack.c.bf16 %v3161_v30, %v3160_v29  ;;  %v3866_v29 = vld [vmem:[%s4964_s2 + $0x20] sm:$0xff]  }
  0x50   : > { %3551 = vmatpush3.bf16.msra.mxu1 %v4027_v0  ;;  %3504 = vmatprep.subr.bf16.mxu0 %v4033_v1  ;;  %v542_v0 = vld [vmem:[%s4051_s15 + $0x52] sm:$0x1]  ;;  %v1160_v37 = vpack.c.bf16 %v3112_v32, %v3111_v31  ;;  %v3867_v30 = vld [vmem:[%s4964_s2 + $0x28] sm:$0xff]   ;;  %v3869_v32 = vld [vmem:[%s4964_s2 + $0x38] sm:$0xff]  }
  0x51   : > { %3552 = vmatprep.subr.bf16.mxu1 %v4033_v1  ;;  %v548_v49 = vpack.c.bf16 %v542_v0, %v542_v0  ;;  %v3166_v0 = vld [vmem:[%s4051_s15 + $0x148] sm:$0xff]  ;;  %v3868_v31 = vld [vmem:[%s4964_s2 + $0x30] sm:$0xff]  }
  0x52   : > { %3505 = vmatpush3.bf16.msra.mxu0 %v4033_v1 }
  0x53   : > { %3518 = vmatprep.subr.bf16.mxu0 %v4044_v2 }
  0x54   : > { %3553 = vmatpush3.bf16.msra.mxu1 %v4033_v1  ;;  %v3169_v1 = vld [vmem:[%s4051_s15 + $0x109] sm:$0xff] }
  0x55   : > { %3447 = vmatmul.mubr.msk.bf16.gmra.mrb[4].mxu0 %vm323_vm0, %v546_v41  ;;  %3566 = vmatprep.subr.bf16.mxu1 %v4044_v2  ;;  %v1578_v52 = vpack.c.bf16 %v3170_v48, %v3169_v1  ;;  %v3164_v41 = vld [vmem:[%s4051_s15 + $0x138] sm:$0xff]  ;;  %v1565_v48 = vpack.c.bf16 %v3167_v45, %v3166_v0 }
  0x56   : > { %3495 = vmatmul.mubr.msk.bf16.gmra.mrb[4].mxu1 %vm323_vm0, %v976_v42  ;;  %3450 = vmatprep.mubr.msk.bf16.mxu0 %vm323_vm0, %v547_v43  ;;  %v3165_v42 = vld [vmem:[%s4051_s15 + $0x140] sm:$0xff]  ;;  %v3115_v43 = vld [vmem:[%s4051_s15 + $0xf0] sm:$0xff] }
  0x57   : > { %3498 = vmatprep.mubr.msk.bf16.mxu1 %vm323_vm0, %v977_v44  ;;  %v3116_v44 = vld [vmem:[%s4051_s15 + $0xf8] sm:$0xff]  ;;  %v1564_v47 = vpack.c.bf16 %v3165_v42, %v3164_v41  ;;  %v670_v41 = vlaneseq }
  0x58   : > { %v1162_v1 = vpack.c.bf16 %v3116_v44, %v3115_v43 }
  0x59   : > { %v4336_v42 = vshrl.u32 %v670_v41, 7 }
  0x5d   : > { %3451 = vmatmul.mubr.msk.bf16.gmra.mrb[16].mxu0 %vm323_vm0, %v548_v49  ;;  %v3168_v49 = vld [vmem:[%s4051_s15 + $0x158] sm:$0x1] }
  0x5e   : > { %3499 = vmatmul.mubr.msk.bf16.gmra.mrb[16].mxu1 %vm323_vm0, %v978_v50  ;;  %3506 = vmatprep.mubr.msk.bf16.mxu0 %vm323_vm0, %v1175_v51  ;;  %v3141_v50 = vld [vmem:[%s4051_s15 + $0xb2] sm:$0xff]  ;;  %v3142_v51 = vld [vmem:[%s4051_s15 + $0xba] sm:$0xff]  ;;  %v1566_v54 = vpack.c.bf16 %v3168_v49, %v3168_v49 }
  0x5f   : > { %3554 = vmatprep.mubr.msk.bf16.mxu1 %vm323_vm0, %v1578_v52  ;;  %v3192_v52 = vld [vmem:[%s4051_s15 + $0x10a] sm:$0xff]  ;;  %v1388_v55 = vpack.c.bf16 %v3142_v51, %v3141_v50  ;;  %v4348_v49 = vld [vmem:[%s4966_s4] sm:$0xff] }
  0x65   : > { %3507 = vmatmul.mubr.msk.bf16.vlgmr.msra.gmra.mrb[20].mxu0 %vm323_vm0, %v1176_v62  ;;  %v3145_v62 = vld [vmem:[%s4051_s15 + $0xd2] sm:$0xff] }
  0x66   : > { %3519 = vmatpush3.bf16.msra.mxu0 %v4044_v2  ;;  %3555 = vmatmul.mubr.msk.bf16.vlgmr.msra.gmra.mrb[20].mxu1 %vm323_vm0, %v1579_v63  ;;  %v3146_v63 = vld [vmem:[%s4051_s15 + $0xda] sm:$0xff] }
  0x67   : > { %3510 = vmatprep.mubr.msk.bf16.mxu0 %vm323_vm0, %v1177_v3  ;;  %3558 = vmatprep.mubr.msk.bf16.mxu1 %vm323_vm0, %v1580_v4  ;;  %v3196_v3 = vld [vmem:[%s4051_s15 + $0x12a] sm:$0xff]  ;;  %v3197_v4 = vld [vmem:[%s4051_s15 + $0x132] sm:$0xff]  ;;  %v1390_v7 = vpack.c.bf16 %v3146_v63, %v3145_v62 }
  0x68   : > { %3567 = vmatpush3.bf16.msra.mxu1 %v4044_v2  ;;  %3520 = vmatprep.subr.bf16.mxu0 %v4064_v10  ;;  %v3128_v2 = vld [vmem:[%s4051_s15 + $0x101] sm:$0x1]  ;;  %v1793_v8 = vpack.c.bf16 %v3197_v4, %v3196_v3 }
  0x69   : > { %3568 = vmatprep.subr.bf16.mxu1 %v4064_v10  ;;  %v1180_v23 = vpack.c.bf16 %v3128_v2, %v3128_v2  ;;  %v1391_v2 = vpack.c.bf16 %v3148_v11, %v3147_v9 }
  0x6a   : > { %3521 = vmatpush3.bf16.msra.mxu0 %v4064_v10 }
  0x6b   : > { %3534 = vmatprep.subr.bf16.mxu0 %v4078_v22 }
  0x6c   : > { %3569 = vmatpush3.bf16.msra.mxu1 %v4064_v10  ;;  %v3158_v10 = vld [vmem:[%s4051_s15 + $0x108] sm:$0xff] }
  0x6d   : > { %3511 = vmatmul.mubr.msk.bf16.gmra.mrb[24].mxu0 %vm323_vm0, %v1178_v14  ;;  %3582 = vmatprep.subr.bf16.mxu1 %v4078_v22  ;;  %v1561_v26 = vpack.c.bf16 %v3159_v21, %v3158_v10  ;;  %v3149_v14 = vld [vmem:[%s4051_s15 + $0xf2] sm:$0xff]  ;;  %v3151_v10 = vld [vmem:[%s4051_s15 + $0x102] sm:$0x1]  ;;  %v3202_v21 = vld [vmem:[%s4051_s15 + $0x15a] sm:$0x1] }
  0x6e   : > { %3559 = vmatmul.mubr.msk.bf16.gmra.mrb[24].mxu1 %vm323_vm0, %v1581_v15  ;;  %3514 = vmatprep.mubr.msk.bf16.mxu0 %vm323_vm0, %v1179_v16  ;;  %v3150_v15 = vld [vmem:[%s4051_s15 + $0xfa] sm:$0xff]  ;;  %v3200_v16 = vld [vmem:[%s4051_s15 + $0x14a] sm:$0xff] }
  0x6f   : > { %3562 = vmatprep.mubr.msk.bf16.mxu1 %vm323_vm0, %v1582_v17  ;;  %v3201_v17 = vld [vmem:[%s4051_s15 + $0x152] sm:$0xff]  ;;  %v1392_v19 = vpack.c.bf16 %v3150_v15, %v3149_v14 }
  0x70   : > { %v1795_v20 = vpack.c.bf16 %v3201_v17, %v3200_v16 }
  0x75   : > { %3515 = vmatmul.mubr.msk.bf16.gmra.mrb[28].mxu0 %vm323_vm0, %v1180_v23  ;;  %v1393_v23 = vpack.c.bf16 %v3151_v10, %v3151_v10 }
  0x76   : > { %3563 = vmatmul.mubr.msk.bf16.gmra.mrb[28].mxu1 %vm323_vm0, %v1583_v24  ;;  %3522 = vmatprep.mubr.msk.bf16.mxu0 %vm323_vm0, %v1158_v25  ;;  %v1796_v24 = vpack.c.bf16 %v3202_v21, %v3202_v21  ;;  %v3862_v25 = vld [vmem:[%s4964_s2] sm:$0xff]  }
  0x77   : > { %3570 = vmatprep.mubr.msk.bf16.mxu1 %vm323_vm0, %v1561_v26  ;;  %v3863_v26 = vld [vmem:[%s4964_s2 + $0x8] sm:$0xff]  }
  0x7d   : > { %3523 = vmatmul.mubr.msk.bf16.vlgmr.msra.gmra.mrb[20].mxu0 %vm323_vm0, %v1159_v35 }
  0x7e   : > { %3535 = vmatpush3.bf16.msra.mxu0 %v4078_v22  ;;  %3571 = vmatmul.mubr.msk.bf16.vlgmr.msra.gmra.mrb[20].mxu1 %vm323_vm0, %v1562_v36 }
  0x7f   : > { %3526 = vmatprep.mubr.msk.bf16.mxu0 %vm323_vm0, %v1160_v37  ;;  %3574 = vmatprep.mubr.msk.bf16.mxu1 %vm323_vm0, %v1563_v38 }
  0x80   : > { %3583 = vmatpush3.bf16.msra.mxu1 %v4078_v22  ;;  %3536 = vmatprep.subr.bf16.mxu0 %v4124_v57  ;;  %v3117_v22 = vld [vmem:[%s4051_s15 + $0x100] sm:$0x1] }
  0x81   : > { %3584 = vmatprep.subr.bf16.mxu1 %v4124_v57  ;;  %v1163_v53 = vpack.c.bf16 %v3117_v22, %v3117_v22 }
  0x82   : > { %3537 = vmatpush3.bf16.msra.mxu0 %v4124_v57 }
  0x83   : > { %3598 = vmatprep.subr.bf16.mxu0 %v3862_v25 }
  0x84   : > { %3585 = vmatpush3.bf16.msra.mxu1 %v4124_v57  ;;  %v3193_v57 = vld [vmem:[%s4051_s15 + $0x112] sm:$0xff] }
  0x85   : > { %3527 = vmatmul.mubr.msk.bf16.gmra.mrb[24].mxu0 %vm323_vm0, %v1161_v46  ;;  %v1791_v56 = vpack.c.bf16 %v3193_v57, %v3192_v52  ;;  %3630 = vmatprep.subr.bf16.mxu1 %v3862_v25  ;;  %v672_v46 = vsub.s32 0, %v4336_v42 }
  0x86   : > { %3575 = vmatmul.mubr.msk.bf16.gmra.mrb[24].mxu1 %vm323_vm0, %v1564_v47  ;;  %3530 = vmatprep.mubr.msk.bf16.mxu0 %vm323_vm0, %v1162_v1 }
  0x87   : > { %3578 = vmatprep.mubr.msk.bf16.mxu1 %vm323_vm0, %v1565_v48 }
  0x8d   : > { %3531 = vmatmul.mubr.msk.bf16.gmra.mrb[32].mxu0 %vm323_vm0, %v1163_v53 }
  0x8e   : > { %3579 = vmatmul.mubr.msk.bf16.gmra.mrb[32].mxu1 %vm323_vm0, %v1566_v54  ;;  %3538 = vmatprep.mubr.msk.bf16.mxu0 %vm323_vm0, %v1388_v55  ;;  %v4357_v55 = vrot.slane %v4348_v49, %v672_v46 }
  0x8f   : > { %3586 = vmatprep.mubr.msk.bf16.mxu1 %vm323_vm0, %v1791_v56 }
  0x95   : > { %3539 = vmatmul.mubr.msk.bf16.vlgmr.msra.gmra.mrb[20].mxu0 %vm323_vm0, %v1389_v5 }
  0x96   : > { %3587 = vmatmul.mubr.msk.bf16.vlgmr.msra.gmra.mrb[20].mxu1 %vm323_vm0, %v1792_v6  ;;  %3542 = vmatprep.mubr.msk.bf16.mxu0 %vm323_vm0, %v1390_v7 }
  0x97   : > { %3590 = vmatprep.mubr.msk.bf16.mxu1 %vm323_vm0, %v1793_v8  ;;  %3599 = vmatpush3.bf16.msra.mxu0 %v3862_v25 }
  0x98   : > { %3631 = vmatpush3.bf16.msra.mxu1 %v3862_v25  ;;  %3600 = vmatprep.subr.bf16.mxu0 %v3863_v26 }
  0x99   : > { %3632 = vmatprep.subr.bf16.mxu1 %v3863_v26 }
  0x9b   : > { %3601 = vmatpush3.bf16.msra.mxu0 %v3863_v26 }
  0x9c   : > { %3633 = vmatpush3.bf16.msra.mxu1 %v3863_v26  ;;  %3602 = vmatprep.subr.bf16.mxu0 %v3864_v27 }
  0x9d   : > { %3543 = vmatmul.mubr.msk.bf16.gmra.mrb[24].mxu0 %vm323_vm0, %v1391_v2  ;;  %3634 = vmatprep.subr.bf16.mxu1 %v3864_v27 }
  0x9e   : > { %3591 = vmatmul.mubr.msk.bf16.gmra.mrb[24].mxu1 %vm323_vm0, %v1794_v18  ;;  %3546 = vmatprep.mubr.msk.bf16.mxu0 %vm323_vm0, %v1392_v19 }
  0x9f   : > { %3594 = vmatprep.mubr.msk.bf16.mxu1 %vm323_vm0, %v1795_v20  ;;  %3603 = vmatpush3.bf16.msra.mxu0 %v3864_v27 }
  0xa0   : > { %3635 = vmatpush3.bf16.msra.mxu1 %v3864_v27  ;;  %3604 = vmatprep.subr.bf16.mxu0 %v3865_v28 }
  0xa1   : > { %3636 = vmatprep.subr.bf16.mxu1 %v3865_v28 }
  0xa3   : > { %3605 = vmatpush3.bf16.msra.mxu0 %v3865_v28 }
  0xa4   : > { %3637 = vmatpush3.bf16.msra.mxu1 %v3865_v28  ;;  %3606 = vmatprep.subr.bf16.mxu0 %v3866_v29 }
  0xa5   : > { %3547 = vmatmul.mubr.msk.bf16.gmra.mrb[36].mxu0 %vm323_vm0, %v1393_v23  ;;  %3638 = vmatprep.subr.bf16.mxu1 %v3866_v29 }
  0xa6   : > { %3595 = vmatmul.mubr.msk.bf16.gmra.mrb[36].mxu1 %vm323_vm0, %v1796_v24 }
  0xa7   : > { %3607 = vmatpush3.bf16.msra.mxu0 %v3866_v29 }
  0xa8   : > { %3639 = vmatpush3.bf16.msra.mxu1 %v3866_v29  ;;  %3608 = vmatprep.subr.bf16.mxu0 %v3867_v30 }
  0xa9   : > { %3640 = vmatprep.subr.bf16.mxu1 %v3867_v30 }
  0xab   : > { %3609 = vmatpush3.bf16.msra.mxu0 %v3867_v30 }
  0xac   : > { %3641 = vmatpush3.bf16.msra.mxu1 %v3867_v30  ;;  %3610 = vmatprep.subr.bf16.mxu0 %v3868_v31 }
  0xad   : > { %3642 = vmatprep.subr.bf16.mxu1 %v3868_v31 }
  0xaf   : > { %3611 = vmatpush3.bf16.msra.mxu0 %v3868_v31 }
  0xb0   : > { %3643 = vmatpush3.bf16.msra.mxu1 %v3868_v31  ;;  %3612 = vmatprep.subr.bf16.mxu0 %v3869_v32 }
  0xb1   : > { %3644 = vmatprep.subr.bf16.mxu1 %v3869_v32 }
  0xb3   : > { %3613 = vmatpush3.bf16.msra.mxu0 %v3869_v32 }
  0xb4   : > { %3645 = vmatpush3.bf16.msra.mxu1 %v3869_v32 }
 0x100   : > { %v3420_v33 = vpop.f32.mrb[8].mxu0 }
 0x101   : > { %v408_v34 = vpop.f32.mrb[9].mxu0  ;;  %v3468_v35 = vpop.f32.mrb[8].mxu1 }
 0x102   : > { %v3421_v36 = vpop.f32.mrb[10].mxu0  ;;  %v850_v37 = vpop.f32.mrb[9].mxu1 }
 0x103   : > { %v411_v38 = vpop.f32.mrb[11].mxu0  ;;  %v3469_v39 = vpop.f32.mrb[10].mxu1 }
 0x104   : > { %v853_v40 = vpop.f32.mrb[11].mxu1 }
 0x118   : > { %v3436_v43 = vpop.f32.mrb[12].mxu0 }
 0x119   : > { %v4338_v44 = vadd.f32 %v3436_v43, %v3420_v33  ;;  %v3484_v0 = vpop.f32.mrb[12].mxu1  ;;  %v518_v45 = vpop.f32.mrb[13].mxu0 }
 0x11a   : > { %v4341_v47 = vadd.f32 %v3484_v0, %v3468_v35  ;;  %v4343_v1 = vadd.f32 %v518_v45, %v408_v34  ;;  %v948_v48 = vpop.f32.mrb[13].mxu1  ;;  %v3437_v22 = vpop.f32.mrb[14].mxu0 }
 0x11b   : > { %v4350_v50 = vadd.f32 %v948_v48, %v850_v37  ;;  %v3485_v51 = vpop.f32.mrb[14].mxu1  ;;  %v521_v52 = vpop.f32.mrb[15].mxu0 }
 0x11c   : > { %v4352_v57 = vadd.f32 %v521_v52, %v411_v38  ;;  %v951_v53 = vpop.f32.mrb[15].mxu1 }
 0x11d   : > { %v4354_v54 = vadd.f32 %v951_v53, %v853_v40 }
 0x120   : > { %v3444_v56 = vpop.f32.mrb[0].mxu0 }
 0x121   : > { %v676_v58 = vadd.f32 %v3444_v56, %v4357_v55  ;;  %v3492_v59 = vpop.f32.mrb[0].mxu1  ;;  %v613_v60 = vpop.f32.mrb[1].mxu0 }
 0x122   : > { %v1090_v61 = vadd.f32 %v3492_v59, %v4357_v55  ;;  %v674_v62 = vadd.f32 %v4357_v55, %v613_v60  ;;  %v1031_v63 = vpop.f32.mrb[1].mxu1  ;;  %v3445_v3 = vpop.f32.mrb[2].mxu0 }
 0x123   : > { %687 = vst [vmem:[#allocation2 + $0x10] sm:$0xff] %v676_v58  ;;  %v1088_v4 = vadd.f32 %v1031_v63, %v4357_v55  ;;  %v677_v5 = vadd.f32 %v3445_v3, %v4357_v55  ;;  %v3493_v6 = vpop.f32.mrb[2].mxu1  ;;  %v616_v7 = vpop.f32.mrb[3].mxu0 }
 0x124   : > { %1101 = vst [vmem:[#allocation2 + $0x68] sm:$0xff] %v1090_v61  ;;  %685 = vst [vmem:[#allocation2] sm:$0xff] %v674_v62  ;;  %v1091_v8 = vadd.f32 %v3493_v6, %v4357_v55  ;;  %v675_v9 = vadd.f32 %v4357_v55, %v616_v7  ;;  %v1034_v11 = vpop.f32.mrb[3].mxu1 }
 0x125   : > { %1099 = vst [vmem:[#allocation2 + $0x58] sm:$0xff] %v1088_v4  ;;  %688 = vst [vmem:[#allocation2 + $0x18] sm:$0xff] %v677_v5  ;;  %v1089_v12 = vadd.f32 %v1034_v11, %v4357_v55 }
 0x126   : > { %1102 = vst [vmem:[#allocation2 + $0x70] sm:$0xff] %v1091_v8  ;;  %686 = vst [vmem:[#allocation2 + $0x8] sm:$0xff] %v675_v9 }
 0x127   : > { %1100 = vst [vmem:[#allocation2 + $0x60] sm:$0xff] %v1089_v12 }
 0x128   : > { %v3448_v13 = vpop.f32.mrb[4].mxu0 }
 0x129   : > { %v680_v14 = vadd.f32 %v3448_v13, %v4357_v55  ;;  %v3496_v15 = vpop.f32.mrb[4].mxu1  ;;  %v629_v16 = vpop.f32.mrb[5].mxu0 }
 0x12a   : > { %v1094_v17 = vadd.f32 %v3496_v15, %v4357_v55  ;;  %v678_v2 = vadd.f32 %v4357_v55, %v629_v16  ;;  %v1047_v18 = vpop.f32.mrb[5].mxu1  ;;  %v3449_v19 = vpop.f32.mrb[6].mxu0 }
 0x12b   : > { %691 = vst [vmem:[#allocation2 + $0x30] sm:$0xff] %v680_v14  ;;  %v1092_v20 = vadd.f32 %v1047_v18, %v4357_v55  ;;  %v681_v10 = vadd.f32 %v3449_v19, %v4357_v55  ;;  %v3497_v21 = vpop.f32.mrb[6].mxu1  ;;  %v632_v23 = vpop.f32.mrb[7].mxu0 }
 0x12c   : > { %1105 = vst [vmem:[#allocation2 + $0x88] sm:$0xff] %v1094_v17  ;;  %689 = vst [vmem:[#allocation2 + $0x20] sm:$0xff] %v678_v2  ;;  %v1095_v24 = vadd.f32 %v3497_v21, %v4357_v55  ;;  %v679_v25 = vadd.f32 %v4357_v55, %v632_v23  ;;  %v1050_v26 = vpop.f32.mrb[7].mxu1 }
 0x12d   : > { %1103 = vst [vmem:[#allocation2 + $0x78] sm:$0xff] %v1092_v20  ;;  %692 = vst [vmem:[#allocation2 + $0x38] sm:$0xff] %v681_v10  ;;  %v1093_v27 = vadd.f32 %v1050_v26, %v4357_v55  ;;  %v696_v29 = vld [vmem:[#allocation2] ss:$3 sm:$0xff]  ;;  %v704_v30 = vld [vmem:[#allocation2 + $0x1] ss:$3 sm:$0xff] }
 0x12e   : > { %1106 = vst [vmem:[#allocation2 + $0x90] sm:$0xff] %v1095_v24  ;;  %690 = vst [vmem:[#allocation2 + $0x28] sm:$0xff] %v679_v25  ;;  %v711_v43 = vmax.f32 %v696_v29, %v704_v30  ;;  %v716_v52 = vld [vmem:[#allocation2 + $0x2] ss:$3 sm:$0xff]  ;;  %v1111_v12 = vld [vmem:[#allocation2 + $0x58] ss:$3 sm:$0xff] }
 0x12f   : > { %1104 = vst [vmem:[#allocation2 + $0x80] sm:$0xff] %v1093_v27  ;;  %v1119_v13 = vld [vmem:[#allocation2 + $0x59] ss:$3 sm:$0xff]  ;;  %v1131_v23 = vld [vmem:[#allocation2 + $0x5a] ss:$3 sm:$0xff] }
 0x130   : > { %v3452_v28 = vpop.f32.mrb[16].mxu0  ;;  %v4387_v58 = vmax.f32 %v711_v43, %v716_v52  ;;  %v1126_v17 = vmax.f32 %v1111_v12, %v1119_v13 }
 0x131   : > { %v669_v31 = vadd.f32 %v3452_v28, %v4338_v44  ;;  %v3500_v32 = vpop.f32.mrb[16].mxu1  ;;  %v645_v33 = vpop.f32.mrb[17].mxu0 }
 0x132   : > { %v1087_v34 = vadd.f32 %v3500_v32, %v4341_v47  ;;  %v667_v35 = vadd.f32 %v645_v33, %v4343_v1  ;;  %v1063_v36 = vpop.f32.mrb[17].mxu1  ;;  %v3453_v37 = vpop.f32.mrb[18].mxu0  ;;  %v4397_v28 = vmax.f32 %v1126_v17, %v1131_v23 }
 0x133   : > { %v684_v38 = vadd.f32 %v4357_v55, %v669_v31  ;;  %v1085_v39 = vadd.f32 %v1063_v36, %v4350_v50  ;;  %v3501_v40 = vpop.f32.mrb[18].mxu1  ;;  %v648_v41 = vpop.f32.mrb[19].mxu0 }
 0x134   : > { %v1098_v0 = vadd.f32 %v1087_v34, %v4357_v55  ;;  %v682_v45 = vadd.f32 %v4357_v55, %v667_v35  ;;  %v668_v44 = vadd.f32 %v648_v41, %v4352_v57  ;;  %v1066_v46 = vpop.f32.mrb[19].mxu1 }
 0x135   : > { %v698_v48 = vld [vmem:[#allocation2 + $0x18] ss:$3 sm:$0xff]  ;;  %v706_v47 = vld [vmem:[#allocation2 + $0x19] ss:$3 sm:$0xff]  ;;  %695 = vst [vmem:[#allocation2 + $0x50] sm:$0x1] %v684_v38  ;;  %v1096_v1 = vadd.f32 %v1085_v39, %v4357_v55  ;;  %v1086_v22 = vadd.f32 %v1066_v46, %v4354_v54 }
 0x136   : > { %v712_v51 = vmax.f32 %v698_v48, %v706_v47  ;;  %1109 = vst [vmem:[#allocation2 + $0xa8] sm:$0x1] %v1098_v0  ;;  %693 = vst [vmem:[#allocation2 + $0x40] sm:$0xff] %v682_v45  ;;  %v683_v50 = vadd.f32 %v4357_v55, %v668_v44  ;;  %v718_v53 = vld [vmem:[#allocation2 + $0x1a] ss:$3 sm:$0xff] }
 0x137   : > { %1107 = vst [vmem:[#allocation2 + $0x98] sm:$0xff] %v1096_v1  ;;  %v1097_v56 = vadd.f32 %v1086_v22, %v4357_v55  ;;  %v1113_v4 = vld [vmem:[#allocation2 + $0x70] ss:$3 sm:$0xff]  ;;  %v1121_v5 = vld [vmem:[#allocation2 + $0x71] ss:$3 sm:$0xff] }
 0x138   : > { %v4389_v57 = vmax.f32 %v712_v51, %v718_v53  ;;  %694 = vst [vmem:[#allocation2 + $0x48] sm:$0xff] %v683_v50  ;;  %v1127_v15 = vmax.f32 %v1113_v4, %v1121_v5  ;;  %v1133_v2 = vld [vmem:[#allocation2 + $0x72] ss:$3 sm:$0xff] }
 0x139   : > { %1108 = vst [vmem:[#allocation2 + $0xa0] sm:$0xff] %v1097_v56 }
 0x13a   : > { %v1968_v59 = vpack.c.bf16 %v4389_v57, %v4387_v58  ;;  %v4393_v19 = vmax.f32 %v1127_v15, %v1133_v2 }
 0x13c   : > { %3614 = vmatprep.mubr.bf16.mxu0 %v1968_v59  ;;  %v1970_v35 = vpack.c.bf16 %v4393_v19, %v4397_v28 }
 0x13d   : > { %v700_v6 = vld [vmem:[#allocation2 + $0x30] ss:$3 sm:$0xff]  ;;  %v708_v9 = vld [vmem:[#allocation2 + $0x31] ss:$3 sm:$0xff]  ;;  %v720_v20 = vld [vmem:[#allocation2 + $0x32] ss:$3 sm:$0xff] }
 0x13e   : > { %v713_v16 = vmax.f32 %v700_v6, %v708_v9  ;;  %v1115_v25 = vld [vmem:[#allocation2 + $0x88] ss:$3 sm:$0xff]  ;;  %v1123_v29 = vld [vmem:[#allocation2 + $0x89] ss:$3 sm:$0xff]  ;;  %v1135_v37 = vld [vmem:[#allocation2 + $0x8a] ss:$3 sm:$0xff] }
 0x13f   : > { %v702_v54 = vld [vmem:[#allocation2 + $0x48] ss:$3 sm:$0x7]  ;;  %v710_v60 = vld [vmem:[#allocation2 + $0x49] ss:$3 sm:$0x7]  ;;  %v1128_v36 = vmax.f32 %v1115_v25, %v1123_v29 }
 0x140   : > { %v714_v61 = vmax.f32 %v702_v54, %v710_v60  ;;  %v1117_v62 = vld [vmem:[#allocation2 + $0xa0] ss:$3 sm:$0x7]  ;;  %v722_v63 = vld [vmem:[#allocation2 + $0x4a] ss:$3 sm:$0x7]  ;;  %v4395_v24 = vmax.f32 %v713_v16, %v720_v20 }
 0x141   : > { %v1125_v3 = vld [vmem:[#allocation2 + $0xa1] ss:$3 sm:$0x7]  ;;  %v1137_v11 = vld [vmem:[#allocation2 + $0xa2] ss:$3 sm:$0x7]  ;;  %v4407_v39 = vmax.f32 %v1128_v36, %v1135_v37 }
 0x142   : > { %v726_v7 = vmax.f32 %v714_v61, %v722_v63  ;;  %v1129_v8 = vmax.f32 %v1117_v62, %v1125_v3 }
 0x144   : > { %730 = vst [vmem:[#allocation3 + $0x18] sm:$0x7] %v726_v7  ;;  %v1141_v14 = vmax.f32 %v1129_v8, %v1137_v11 }
 0x146   : > { %1145 = vst [vmem:[#allocation3 + $0x38] sm:$0x7] %v1141_v14 }
 0x148   : > { %v3516_v18 = vpop.f32.mrb[28].mxu0 }
 0x149   : > { %v1265_v10 = vpop.f32.mrb[29].mxu0  ;;  %v3564_v21 = vpop.f32.mrb[28].mxu1 }
 0x14a   : > { %v3517_v26 = vpop.f32.mrb[30].mxu0  ;;  %v1668_v27 = vpop.f32.mrb[29].mxu1 }
 0x14b   : > { %v1268_v30 = vpop.f32.mrb[31].mxu0  ;;  %v4399_v31 = vld [vmem:[#allocation3 + $0x18] sm:$0xff]  ;;  %v3565_v32 = vpop.f32.mrb[30].mxu1 }
 0x14c   : > { %v1969_v33 = vpack.c.bf16 %v4399_v31, %v4395_v24  ;;  %v1671_v34 = vpop.f32.mrb[31].mxu1 }
 0x14d   : > { %v4405_v38 = vld [vmem:[#allocation3 + $0x38] sm:$0xff] }
 0x14e   : > { %3615 = vmatmul.mubr.bf16.vlgmr.msra.gmra.mrb[40].mxu0 %v1969_v33  ;;  %v1971_v40 = vpack.c.bf16 %v4405_v38, %v4407_v39 }
 0x14f   : > { %3618 = vmatprep.mubr.bf16.mxu0 %v1970_v35 }
 0x156   : > { %3619 = vmatmul.mubr.bf16.gmra.mrb[44].mxu0 %v1971_v40 }
 0x160   : > { %v3532_v41 = vpop.f32.mrb[32].mxu0 }
 0x161   : > { %v1372_v43 = vadd.f32 %v3532_v41, %v3516_v18  ;;  %v3580_v0 = vpop.f32.mrb[32].mxu1  ;;  %v1363_v45 = vpop.f32.mrb[33].mxu0 }
 0x162   : > { %v4411_v44 = vadd.f32 %v3580_v0, %v3564_v21  ;;  %v4413_v46 = vadd.f32 %v1363_v45, %v1265_v10  ;;  %v1766_v48 = vpop.f32.mrb[33].mxu1  ;;  %v3533_v47 = vpop.f32.mrb[34].mxu0 }
 0x163   : > { %v4415_v1 = vadd.f32 %v1766_v48, %v1668_v27  ;;  %v3581_v22 = vpop.f32.mrb[34].mxu1  ;;  %v1366_v51 = vpop.f32.mrb[35].mxu0 }
 0x164   : > { %v4417_v50 = vadd.f32 %v1366_v51, %v1268_v30  ;;  %v1769_v52 = vpop.f32.mrb[35].mxu1 }
 0x165   : > { %v4419_v53 = vadd.f32 %v1769_v52, %v1671_v34 }
 0x168   : > { %v3540_v56 = vpop.f32.mrb[20].mxu0 }
 0x169   : > { %v1505_v59 = vadd.f32 %v3540_v56, %v4357_v55  ;;  %v3588_v54 = vpop.f32.mrb[20].mxu1  ;;  %v1446_v60 = vpop.f32.mrb[21].mxu0 }
 0x16a   : > { %v1908_v61 = vadd.f32 %v3588_v54, %v4357_v55  ;;  %v1503_v62 = vadd.f32 %v1446_v60, %v4357_v55  ;;  %v1849_v63 = vpop.f32.mrb[21].mxu1  ;;  %v3541_v3 = vpop.f32.mrb[22].mxu0 }
 0x16b   : > { %1516 = vst [vmem:[#allocation2 + $0x10] sm:$0xff] %v1505_v59  ;;  %v1906_v4 = vadd.f32 %v1849_v63, %v4357_v55  ;;  %v1506_v5 = vadd.f32 %v3541_v3, %v4357_v55  ;;  %v3589_v6 = vpop.f32.mrb[22].mxu1  ;;  %v1449_v7 = vpop.f32.mrb[23].mxu0 }
 0x16c   : > { %1919 = vst [vmem:[#allocation2 + $0x68] sm:$0xff] %v1908_v61  ;;  %1514 = vst [vmem:[#allocation2] sm:$0xff] %v1503_v62  ;;  %v1909_v8 = vadd.f32 %v3589_v6, %v4357_v55  ;;  %v1504_v9 = vadd.f32 %v1449_v7, %v4357_v55  ;;  %v1852_v11 = vpop.f32.mrb[23].mxu1 }
 0x16d   : > { %1917 = vst [vmem:[#allocation2 + $0x58] sm:$0xff] %v1906_v4  ;;  %1517 = vst [vmem:[#allocation2 + $0x18] sm:$0xff] %v1506_v5  ;;  %v1907_v12 = vadd.f32 %v1852_v11, %v4357_v55 }
 0x16e   : > { %1920 = vst [vmem:[#allocation2 + $0x70] sm:$0xff] %v1909_v8  ;;  %1515 = vst [vmem:[#allocation2 + $0x8] sm:$0xff] %v1504_v9 }
 0x16f   : > { %1918 = vst [vmem:[#allocation2 + $0x60] sm:$0xff] %v1907_v12 }
 0x170   : > { %v3544_v13 = vpop.f32.mrb[24].mxu0 }
 0x171   : > { %v1509_v14 = vadd.f32 %v3544_v13, %v4357_v55  ;;  %v3592_v15 = vpop.f32.mrb[24].mxu1  ;;  %v1462_v16 = vpop.f32.mrb[25].mxu0 }
 0x172   : > { %v1912_v17 = vadd.f32 %v3592_v15, %v4357_v55  ;;  %v1507_v2 = vadd.f32 %v1462_v16, %v4357_v55  ;;  %v1865_v18 = vpop.f32.mrb[25].mxu1  ;;  %v3545_v20 = vpop.f32.mrb[26].mxu0 }
 0x173   : > { %1520 = vst [vmem:[#allocation2 + $0x30] sm:$0xff] %v1509_v14  ;;  %v1910_v10 = vadd.f32 %v1865_v18, %v4357_v55  ;;  %v1510_v21 = vadd.f32 %v3545_v20, %v4357_v55  ;;  %v3593_v23 = vpop.f32.mrb[26].mxu1  ;;  %v1465_v25 = vpop.f32.mrb[27].mxu0 }
 0x174   : > { %1923 = vst [vmem:[#allocation2 + $0x88] sm:$0xff] %v1912_v17  ;;  %1518 = vst [vmem:[#allocation2 + $0x20] sm:$0xff] %v1507_v2  ;;  %v1913_v26 = vadd.f32 %v3593_v23, %v4357_v55  ;;  %v1508_v27 = vadd.f32 %v1465_v25, %v4357_v55  ;;  %v1868_v29 = vpop.f32.mrb[27].mxu1 }
 0x175   : > { %1921 = vst [vmem:[#allocation2 + $0x78] sm:$0xff] %v1910_v10  ;;  %1521 = vst [vmem:[#allocation2 + $0x38] sm:$0xff] %v1510_v21  ;;  %v1911_v30 = vadd.f32 %v1868_v29, %v4357_v55  ;;  %v1525_v36 = vld [vmem:[#allocation2] ss:$3 sm:$0xff]  ;;  %v1529_v37 = vld [vmem:[#allocation2 + $0x1] ss:$3 sm:$0xff] }
 0x176   : > { %1924 = vst [vmem:[#allocation2 + $0x90] sm:$0xff] %v1913_v26  ;;  %1519 = vst [vmem:[#allocation2 + $0x28] sm:$0xff] %v1508_v27  ;;  %v1533_v54 = vmax.f32 %v1525_v36, %v1529_v37  ;;  %v1537_v3 = vld [vmem:[#allocation2 + $0x2] ss:$3 sm:$0xff]  ;;  %v1928_v18 = vld [vmem:[#allocation2 + $0x58] ss:$3 sm:$0xff] }
 0x177   : > { %1922 = vst [vmem:[#allocation2 + $0x80] sm:$0xff] %v1911_v30  ;;  %v1932_v20 = vld [vmem:[#allocation2 + $0x59] ss:$3 sm:$0xff] }
 0x178   : > { %v3548_v32 = vpop.f32.mrb[36].mxu0  ;;  %v1936_v25 = vmax.f32 %v1928_v18, %v1932_v20 }
 0x179   : > { %v1502_v33 = vadd.f32 %v3548_v32, %v1372_v43  ;;  %v3596_v34 = vpop.f32.mrb[36].mxu1  ;;  %v1478_v35 = vpop.f32.mrb[37].mxu0  ;;  %v1940_v32 = vld [vmem:[#allocation2 + $0x5a] ss:$3 sm:$0xff] }
 0x17a   : > { %v1905_v40 = vadd.f32 %v3596_v34, %v4411_v44  ;;  %v1500_v41 = vadd.f32 %v1478_v35, %v4413_v46  ;;  %v1881_v0 = vpop.f32.mrb[37].mxu1  ;;  %v3549_v45 = vpop.f32.mrb[38].mxu0  ;;  %v4460_v34 = vmax.f32 %v1936_v25, %v1940_v32 }
 0x17b   : > { %v1513_v48 = vadd.f32 %v1502_v33, %v4357_v55  ;;  %v1903_v47 = vadd.f32 %v1881_v0, %v4415_v1  ;;  %v3597_v22 = vpop.f32.mrb[38].mxu1  ;;  %v1481_v51 = vpop.f32.mrb[39].mxu0 }
 0x17c   : > { %v1916_v52 = vadd.f32 %v1905_v40, %v4357_v55  ;;  %v1511_v43 = vadd.f32 %v1500_v41, %v4357_v55  ;;  %v1501_v56 = vadd.f32 %v1481_v51, %v4417_v50  ;;  %v1884_v59 = vpop.f32.mrb[39].mxu1  ;;  %v4448_v50 = vmax.f32 %v1533_v54, %v1537_v3 }
 0x17d   : > { %1524 = vst [vmem:[#allocation2 + $0x50] sm:$0x1] %v1513_v48  ;;  %v1914_v44 = vadd.f32 %v1903_v47, %v4357_v55  ;;  %v1904_v46 = vadd.f32 %v1884_v59, %v4419_v53  ;;  %v1526_v60 = vld [vmem:[#allocation2 + $0x18] ss:$3 sm:$0xff]  ;;  %v1530_v61 = vld [vmem:[#allocation2 + $0x19] ss:$3 sm:$0xff] }
 0x17e   : > { %1927 = vst [vmem:[#allocation2 + $0xa8] sm:$0x1] %v1916_v52  ;;  %1522 = vst [vmem:[#allocation2 + $0x40] sm:$0xff] %v1511_v43  ;;  %v1512_v1 = vadd.f32 %v1501_v56, %v4357_v55  ;;  %v1534_v62 = vmax.f32 %v1526_v60, %v1530_v61  ;;  %v1538_v4 = vld [vmem:[#allocation2 + $0x1a] ss:$3 sm:$0xff]  ;;  %v1978_v22 = vsub.s32 1, %v4336_v42 }
 0x17f   : > { %1925 = vst [vmem:[#allocation2 + $0x98] sm:$0xff] %v1914_v44  ;;  %v1915_v63 = vadd.f32 %v1904_v46, %v4357_v55  ;;  %v1929_v14 = vld [vmem:[#allocation2 + $0x70] ss:$3 sm:$0xff]  ;;  %v1933_v15 = vld [vmem:[#allocation2 + $0x71] ss:$3 sm:$0xff]  ;;  %v2143_v52 = vsub.s32 2, %v4336_v42 }
 0x180   : > { %1523 = vst [vmem:[#allocation2 + $0x48] sm:$0xff] %v1512_v1  ;;  %v4450_v5 = vmax.f32 %v1534_v62, %v1538_v4  ;;  %v1937_v21 = vmax.f32 %v1929_v14, %v1933_v15  ;;  %v1941_v26 = vld [vmem:[#allocation2 + $0x72] ss:$3 sm:$0xff]  ;;  %v4474_v51 = vrot.slane %v4348_v49, %v1978_v22  ;;  %v2163_v56 = vsub.s32 3, %v4336_v42 }
 0x181   : > { %1926 = vst [vmem:[#allocation2 + $0xa0] sm:$0xff] %v1915_v63  ;;  %v4482_v54 = vrot.slane %v4348_v49, %v2143_v52 }
 0x182   : > { %v1972_v53 = vpack.c.bf16 %v4450_v5, %v4448_v50  ;;  %v4454_v29 = vmax.f32 %v1937_v21, %v1941_v26  ;;  %v4493_v63 = vrot.slane %v4348_v49, %v2163_v56 }
 0x184   : > { %3622 = vmatprep.mubr.bf16.mxu0 %v1972_v53  ;;  %v1974_v40 = vpack.c.bf16 %v4454_v29, %v4460_v34 }
 0x185   : > { %v1527_v13 = vld [vmem:[#allocation2 + $0x30] ss:$3 sm:$0xff]  ;;  %v1531_v17 = vld [vmem:[#allocation2 + $0x31] ss:$3 sm:$0xff]  ;;  %v1539_v27 = vld [vmem:[#allocation2 + $0x32] ss:$3 sm:$0xff] }
 0x186   : > { %v1535_v23 = vmax.f32 %v1527_v13, %v1531_v17  ;;  %v1930_v35 = vld [vmem:[#allocation2 + $0x88] ss:$3 sm:$0xff]  ;;  %v1934_v36 = vld [vmem:[#allocation2 + $0x89] ss:$3 sm:$0xff]  ;;  %v1942_v0 = vld [vmem:[#allocation2 + $0x8a] ss:$3 sm:$0xff] }
 0x187   : > { %v1528_v6 = vld [vmem:[#allocation2 + $0x48] ss:$3 sm:$0x7]  ;;  %v1532_v7 = vld [vmem:[#allocation2 + $0x49] ss:$3 sm:$0x7]  ;;  %v1938_v41 = vmax.f32 %v1930_v35, %v1934_v36 }
 0x188   : > { %v1536_v8 = vmax.f32 %v1528_v6, %v1532_v7  ;;  %v1931_v9 = vld [vmem:[#allocation2 + $0xa0] ss:$3 sm:$0x7]  ;;  %v1540_v11 = vld [vmem:[#allocation2 + $0x4a] ss:$3 sm:$0x7]  ;;  %v4456_v30 = vmax.f32 %v1535_v23, %v1539_v27 }
 0x189   : > { %v1935_v12 = vld [vmem:[#allocation2 + $0xa1] ss:$3 sm:$0x7]  ;;  %v1943_v2 = vld [vmem:[#allocation2 + $0xa2] ss:$3 sm:$0x7]  ;;  %v4468_v48 = vmax.f32 %v1938_v41, %v1942_v0 }
 0x18a   : > { %v1544_v55 = vmax.f32 %v1536_v8, %v1540_v11  ;;  %v1939_v16 = vmax.f32 %v1931_v9, %v1935_v12 }
 0x18c   : > { %1548 = vst [vmem:[#allocation3 + $0x58] sm:$0x7] %v1544_v55  ;;  %v1947_v10 = vmax.f32 %v1939_v16, %v1943_v2 }
 0x18e   : > { %1951 = vst [vmem:[#allocation3 + $0x78] sm:$0x7] %v1947_v10 }
 0x193   : > { %v4458_v33 = vld [vmem:[#allocation3 + $0x58] sm:$0xff] }
 0x194   : > { %v1973_v37 = vpack.c.bf16 %v4458_v33, %v4456_v30 }
 0x195   : > { %v4466_v45 = vld [vmem:[#allocation3 + $0x78] sm:$0xff] }
 0x196   : > { %3623 = vmatmul.mubr.bf16.gmra.mrb[48].mxu0 %v1973_v37  ;;  %v1975_v47 = vpack.c.bf16 %v4466_v45, %v4468_v48 }
 0x197   : > { %3626 = vmatprep.mubr.bf16.mxu0 %v1974_v40 }
 0x19e   : > { %3627 = vmatmul.mubr.bf16.gmra.mrb[52].mxu0 %v1975_v47 }
 0x221   : > { %v3616_v43 = vpop.f32.mrb[40].mxu0 }
 0x222   : > { %v4479_v59 = vadd.f32 %v3616_v43, %v4474_v51  ;;  %v2062_v44 = vpop.f32.mrb[41].mxu0 }
 0x223   : > { %v4485_v46 = vadd.f32 %v2062_v44, %v4474_v51  ;;  %v3617_v60 = vpop.f32.mrb[42].mxu0 }
 0x224   : > { %v2127_v61 = vadd.f32 %v4479_v59, %v4395_v24  ;;  %v4490_v1 = vadd.f32 %v3617_v60, %v4474_v51  ;;  %v2065_v62 = vpop.f32.mrb[43].mxu0 }
 0x225   : > { %v2125_v3 = vadd.f32 %v4485_v46, %v4387_v58  ;;  %v4498_v4 = vadd.f32 %v2065_v62, %v4474_v51 }
 0x226   : > { %v2147_v53 = vmul.f32 %v4482_v54, %v2127_v61  ;;  %v2128_v6 = vadd.f32 %v4490_v1, %v4399_v31 }
 0x227   : > { %v2145_v24 = vmul.f32 %v4482_v54, %v2125_v3  ;;  %v2126_v7 = vadd.f32 %v4498_v4, %v4389_v57 }
 0x228   : > { %v2148_v8 = vmul.f32 %v4482_v54, %v2128_v6  ;;  %v2167_v11 = vadd.f32 %v4493_v63, %v2147_v53 }
 0x229   : > { %v2146_v49 = vmul.f32 %v4482_v54, %v2126_v7  ;;  %v3620_v9 = vpop.f32.mrb[44].mxu0  ;;  %v2165_v58 = vadd.f32 %v4493_v63, %v2145_v24 }
 0x22a   : > { %v2168_v12 = vadd.f32 %v4493_v63, %v2148_v8  ;;  %v4512_v13 = vadd.f32 %v3620_v9, %v4474_v51  ;;  %v2078_v31 = vpop.f32.mrb[45].mxu0  ;;  %v2183_v23 = vmax.f32 %v2167_v11, 0.0 }
 0x22b   : > { %v4515_v55 = vadd.f32 %v2078_v31, %v4474_v51  ;;  %v3621_v14 = vpop.f32.mrb[46].mxu0  ;;  %v2166_v57 = vadd.f32 %v4493_v63, %v2146_v49  ;;  %v2181_v10 = vmax.f32 %v2165_v58, 0.0 }
 0x22c   : > { %v2184_v15 = vmax.f32 %v2168_v12, 0.0  ;;  %v2131_v16 = vadd.f32 %v4512_v13, %v4407_v39  ;;  %v4521_v17 = vadd.f32 %v3621_v14, %v4474_v51  ;;  %v2081_v2 = vpop.f32.mrb[47].mxu0 }
 0x22d   : > { %v2129_v18 = vadd.f32 %v4515_v55, %v4397_v28  ;;  %v4526_v20 = vadd.f32 %v2081_v2, %v4474_v51  ;;  %v2182_v21 = vmax.f32 %v2166_v57, 0.0 }
 0x22e   : > { %v2151_v25 = vmul.f32 %v4482_v54, %v2131_v16  ;;  %v2132_v26 = vadd.f32 %v4521_v17, %v4405_v38  ;;  %v2198_v35 = vpack.c.bf16 %v2184_v15, %v2183_v23 }
 0x22f   : > { %v2149_v39 = vmul.f32 %v4482_v54, %v2129_v18  ;;  %v2130_v27 = vadd.f32 %v4526_v20, %v4393_v19  ;;  %v2197_v32 = vpack.c.bf16 %v2182_v21, %v2181_v10 }
 0x230   : > { %v2152_v28 = vmul.f32 %v4482_v54, %v2132_v26  ;;  %v2171_v40 = vadd.f32 %v4493_v63, %v2151_v25 }
 0x231   : > { %v2150_v36 = vmul.f32 %v4482_v54, %v2130_v27  ;;  %3646 = vmatprep.mubr.bf16.mxu1 %v2197_v32  ;;  %v2169_v37 = vadd.f32 %v4493_v63, %v2149_v39 }
 0x232   : > { %3647 = vmatmul.mubr.bf16.vlgmr.msra.gmra.mrb[40].mxu1 %v2198_v35  ;;  %v2172_v41 = vadd.f32 %v4493_v63, %v2152_v28  ;;  %v2187_v19 = vmax.f32 %v2171_v40, 0.0 }
 0x233   : > { %v2170_v38 = vadd.f32 %v4493_v63, %v2150_v36  ;;  %v2185_v47 = vmax.f32 %v2169_v37, 0.0 }
 0x234   : > { %v2188_v0 = vmax.f32 %v2172_v41, 0.0 }
 0x235   : > { %v2186_v22 = vmax.f32 %v2170_v38, 0.0 }
 0x236   : > { %v2200_v43 = vpack.c.bf16 %v2188_v0, %v2187_v19 }
 0x237   : > { %v2199_v52 = vpack.c.bf16 %v2186_v22, %v2185_v47 }
 0x239   : > { %3650 = vmatprep.mubr.bf16.mxu1 %v2199_v52 }
 0x23a   : > { %3651 = vmatmul.mubr.bf16.gmra.mrb[44].mxu1 %v2200_v43 }
 0x269   : > { %v3624_v56 = vpop.f32.mrb[48].mxu0 }
 0x26a   : > { %v4541_v44 = vadd.f32 %v3624_v56, %v4474_v51  ;;  %v2094_v60 = vpop.f32.mrb[49].mxu0  ;;  %v4599_v56 = vld [vmem:[%s4965_s3] sm:$0xff]  }
 0x26b   : > { %v4544_v61 = vadd.f32 %v2094_v60, %v4474_v51  ;;  %v3625_v62 = vpop.f32.mrb[50].mxu0  ;;  %3662 = vmatprep.subr.bf16.mxu0 %v4599_v56  ;;  %3686 = vmatprep.subr.bf16.mxu1 %v4599_v56  ;;  %v4608_v60 = vld [vmem:[%s4965_s3 + $0x8] sm:$0xff]  }
 0x26c   : > { %v2135_v3 = vadd.f32 %v4541_v44, %v4456_v30  ;;  %v4549_v53 = vadd.f32 %v3625_v62, %v4474_v51  ;;  %v2097_v6 = vpop.f32.mrb[51].mxu0  ;;  %3663 = vmatpush3.bf16.msra.mxu0 %v4599_v56  ;;  %3687 = vmatpush3.bf16.msra.mxu1 %v4599_v56  ;;  %v4617_v62 = vld [vmem:[%s4965_s3 + $0x10] sm:$0xff]  }
 0x26d   : > { %v2133_v24 = vadd.f32 %v4544_v61, %v4448_v50  ;;  %v4554_v7 = vadd.f32 %v2097_v6, %v4474_v51  ;;  %3664 = vmatprep.subr.bf16.mxu0 %v4608_v60  ;;  %3688 = vmatprep.subr.bf16.mxu1 %v4608_v60  ;;  %v4635_v6 = vld [vmem:[%s4965_s3 + $0x20] sm:$0xff]  }
 0x26e   : > { %v2155_v8 = vmul.f32 %v4482_v54, %v2135_v3  ;;  %v2136_v49 = vadd.f32 %v4549_v53, %v4458_v33  ;;  %v4626_v3 = vld [vmem:[%s4965_s3 + $0x18] sm:$0xff]  }
 0x26f   : > { %v2153_v9 = vmul.f32 %v4482_v54, %v2133_v24  ;;  %v2134_v30 = vadd.f32 %v4554_v7, %v4450_v5  ;;  %v4644_v24 = vld [vmem:[%s4965_s3 + $0x28] sm:$0xff]  }
 0x270   : > { %v2156_v58 = vmul.f32 %v4482_v54, %v2136_v49  ;;  %v2175_v57 = vadd.f32 %v4493_v63, %v2155_v8  ;;  %3665 = vmatpush3.bf16.msra.mxu0 %v4608_v60  ;;  %3689 = vmatpush3.bf16.msra.mxu1 %v4608_v60  ;;  %v4650_v8 = vld [vmem:[%s4965_s3 + $0x30] sm:$0xff]   ;;  %v4659_v49 = vld [vmem:[%s4965_s3 + $0x38] sm:$0xff]  }
 0x271   : > { %v2154_v11 = vmul.f32 %v4482_v54, %v2134_v30  ;;  %v3628_v12 = vpop.f32.mrb[52].mxu0  ;;  %v2173_v50 = vadd.f32 %v4493_v63, %v2153_v9  ;;  %3666 = vmatprep.subr.bf16.mxu0 %v4617_v62  ;;  %3690 = vmatprep.subr.bf16.mxu1 %v4617_v62 }
 0x272   : > { %v4566_v31 = vadd.f32 %v3628_v12, %v4474_v51  ;;  %v2110_v14 = vpop.f32.mrb[53].mxu0  ;;  %v2176_v33 = vadd.f32 %v4493_v63, %v2156_v58  ;;  %v2191_v35 = vmax.f32 %v2175_v57, 0.0 }
 0x273   : > { %v4571_v15 = vadd.f32 %v2110_v14, %v4474_v51  ;;  %v3629_v16 = vpop.f32.mrb[54].mxu0  ;;  %v2174_v5 = vadd.f32 %v4493_v63, %v2154_v11  ;;  %v2189_v26 = vmax.f32 %v2173_v50, 0.0 }
 0x274   : > { %v2139_v2 = vadd.f32 %v4566_v31, %v4468_v48  ;;  %v4577_v18 = vadd.f32 %v3629_v16, %v4474_v51  ;;  %v2113_v10 = vpop.f32.mrb[55].mxu0  ;;  %v2192_v21 = vmax.f32 %v2176_v33, 0.0  ;;  %3667 = vmatpush3.bf16.msra.mxu0 %v4617_v62  ;;  %3691 = vmatpush3.bf16.msra.mxu1 %v4617_v62 }
 0x275   : > { %v2137_v23 = vadd.f32 %v4571_v15, %v4460_v34  ;;  %v4582_v25 = vadd.f32 %v2113_v10, %v4474_v51  ;;  %v2190_v39 = vmax.f32 %v2174_v5, 0.0  ;;  %3668 = vmatprep.subr.bf16.mxu0 %v4626_v3  ;;  %3692 = vmatprep.subr.bf16.mxu1 %v4626_v3 }
 0x276   : > { %v2159_v27 = vmul.f32 %v4482_v54, %v2139_v2  ;;  %v2140_v32 = vadd.f32 %v4577_v18, %v4466_v45  ;;  %v2202_v34 = vpack.c.bf16 %v2192_v21, %v2191_v35 }
 0x277   : > { %v2157_v48 = vmul.f32 %v4482_v54, %v2137_v23  ;;  %v2138_v28 = vadd.f32 %v4582_v25, %v4454_v29  ;;  %v2201_v36 = vpack.c.bf16 %v2190_v39, %v2189_v26 }
 0x278   : > { %v2160_v37 = vmul.f32 %v4482_v54, %v2140_v32  ;;  %v2179_v38 = vadd.f32 %v4493_v63, %v2159_v27  ;;  %3669 = vmatpush3.bf16.msra.mxu0 %v4626_v3  ;;  %3693 = vmatpush3.bf16.msra.mxu1 %v4626_v3 }
 0x279   : > { %v2158_v40 = vmul.f32 %v4482_v54, %v2138_v28  ;;  %3654 = vmatprep.mubr.bf16.mxu1 %v2201_v36  ;;  %v2177_v41 = vadd.f32 %v4493_v63, %v2157_v48  ;;  %3670 = vmatprep.subr.bf16.mxu0 %v4635_v6 }
 0x27a   : > { %3655 = vmatmul.mubr.bf16.gmra.mrb[48].mxu1 %v2202_v34  ;;  %v2180_v45 = vadd.f32 %v4493_v63, %v2160_v37  ;;  %v2195_v29 = vmax.f32 %v2179_v38, 0.0  ;;  %3694 = vmatprep.subr.bf16.mxu1 %v4635_v6 }
 0x27b   : > { %v2178_v0 = vadd.f32 %v4493_v63, %v2158_v40  ;;  %v2193_v22 = vmax.f32 %v2177_v41, 0.0 }
 0x27c   : > { %v2196_v47 = vmax.f32 %v2180_v45, 0.0  ;;  %3671 = vmatpush3.bf16.msra.mxu0 %v4635_v6  ;;  %3695 = vmatpush3.bf16.msra.mxu1 %v4635_v6 }
 0x27d   : > { %v2194_v19 = vmax.f32 %v2178_v0, 0.0  ;;  %3672 = vmatprep.subr.bf16.mxu0 %v4644_v24  ;;  %3696 = vmatprep.subr.bf16.mxu1 %v4644_v24 }
 0x27e   : > { %v2204_v43 = vpack.c.bf16 %v2196_v47, %v2195_v29 }
 0x27f   : > { %v2203_v52 = vpack.c.bf16 %v2194_v19, %v2193_v22 }
 0x280   : > { %3673 = vmatpush3.bf16.msra.mxu0 %v4644_v24  ;;  %3697 = vmatpush3.bf16.msra.mxu1 %v4644_v24 }
 0x281   : > { %3658 = vmatprep.mubr.bf16.mxu1 %v2203_v52  ;;  %3674 = vmatprep.subr.bf16.mxu0 %v4650_v8 }
 0x282   : > { %3659 = vmatmul.mubr.bf16.gmra.mrb[52].mxu1 %v2204_v43  ;;  %3698 = vmatprep.subr.bf16.mxu1 %v4650_v8 }
 0x284   : > { %3675 = vmatpush3.bf16.msra.mxu0 %v4650_v8  ;;  %3699 = vmatpush3.bf16.msra.mxu1 %v4650_v8 }
 0x285   : > { %3676 = vmatprep.subr.bf16.mxu0 %v4659_v49  ;;  %3700 = vmatprep.subr.bf16.mxu1 %v4659_v49 }
 0x288   : > { %3677 = vmatpush3.bf16.msra.mxu0 %v4659_v49  ;;  %3701 = vmatpush3.bf16.msra.mxu1 %v4659_v49 }
 0x289   : > { %3710 = vmatprep.subr.bf16.mxu0 %v4599_v56  ;;  %3730 = vmatprep.subr.bf16.mxu1 %v4599_v56 }
 0x305   : > { %v3648_v9 = vpop.f32.mrb[40].mxu1 }
 0x306   : > { %v2248_v30 = vadd.f32 %v3648_v9, %v4474_v51  ;;  %v2239_v58 = vpop.f32.mrb[41].mxu1 }
 0x307   : > { %v2240_v11 = vadd.f32 %v2239_v58, %v4474_v51  ;;  %v3649_v12 = vpop.f32.mrb[42].mxu1 }
 0x308   : > { %v2304_v50 = vadd.f32 %v2248_v30, %v4479_v59  ;;  %v2251_v14 = vadd.f32 %v3649_v12, %v4474_v51  ;;  %v2242_v57 = vpop.f32.mrb[43].mxu1 }
 0x309   : > { %v2302_v33 = vadd.f32 %v2240_v11, %v4485_v46  ;;  %v2243_v16 = vadd.f32 %v2242_v57, %v4474_v51 }
 0x30a   : > { %v2320_v5 = vmax.f32 %v2304_v50, 0.0  ;;  %v2305_v2 = vadd.f32 %v2251_v14, %v4490_v1 }
 0x30b   : > { %v2318_v10 = vmax.f32 %v2302_v33, 0.0  ;;  %v2303_v21 = vadd.f32 %v2243_v16, %v4498_v4 }
 0x30c   : > { %v2336_v23 = vmul.f32 %v2320_v5, %v4482_v54  ;;  %v2321_v26 = vmax.f32 %v2305_v2, 0.0 }
 0x30d   : > { %v2334_v39 = vmul.f32 %v2318_v10, %v4482_v54  ;;  %v2319_v27 = vmax.f32 %v2303_v21, 0.0  ;;  %v3652_v59 = vpop.f32.mrb[44].mxu1 }
 0x30e   : > { %v2352_v32 = vadd.f32 %v2336_v23, %v4493_v63  ;;  %v2337_v35 = vmul.f32 %v2321_v26, %v4482_v54  ;;  %v2264_v46 = vadd.f32 %v3652_v59, %v4474_v51  ;;  %v2255_v48 = vpop.f32.mrb[45].mxu1 }
 0x30f   : > { %v2350_v28 = vadd.f32 %v2334_v39, %v4493_v63  ;;  %v2335_v1 = vmul.f32 %v2319_v27, %v4482_v54  ;;  %v2256_v4 = vadd.f32 %v2255_v48, %v4474_v51  ;;  %v3653_v36 = vpop.f32.mrb[46].mxu1 }
 0x310   : > { %2368 = vst [vmem:[#allocation3 + $0x10] sm:$0xff] %v2352_v32  ;;  %v2353_v37 = vadd.f32 %v2337_v35, %v4493_v63  ;;  %v2308_v34 = vadd.f32 %v2264_v46, %v4512_v13  ;;  %v2267_v40 = vadd.f32 %v3653_v36, %v4474_v51  ;;  %v2258_v41 = vpop.f32.mrb[47].mxu1 }
 0x311   : > { %2366 = vst [vmem:[#allocation3] sm:$0xff] %v2350_v28  ;;  %v2351_v38 = vadd.f32 %v2335_v1, %v4493_v63  ;;  %v2306_v45 = vadd.f32 %v2256_v4, %v4515_v55  ;;  %v2259_v0 = vadd.f32 %v2258_v41, %v4474_v51 }
 0x312   : > { %2369 = vst [vmem:[#allocation3 + $0x18] sm:$0xff] %v2353_v37  ;;  %v2324_v47 = vmax.f32 %v2308_v34, 0.0  ;;  %v2309_v22 = vadd.f32 %v2267_v40, %v4521_v17 }
 0x313   : > { %2367 = vst [vmem:[#allocation3 + $0x8] sm:$0xff] %v2351_v38  ;;  %v2322_v19 = vmax.f32 %v2306_v45, 0.0  ;;  %v2307_v29 = vadd.f32 %v2259_v0, %v4526_v20 }
 0x314   : > { %v2340_v13 = vmul.f32 %v2324_v47, %v4482_v54  ;;  %v2325_v52 = vmax.f32 %v2309_v22, 0.0 }
 0x315   : > { %v2338_v43 = vmul.f32 %v2322_v19, %v4482_v54  ;;  %v2323_v9 = vmax.f32 %v2307_v29, 0.0 }
 0x316   : > { %v2356_v30 = vadd.f32 %v2340_v13, %v4493_v63  ;;  %v2341_v55 = vmul.f32 %v2325_v52, %v4482_v54 }
 0x317   : > { %v2354_v58 = vadd.f32 %v2338_v43, %v4493_v63  ;;  %v2339_v11 = vmul.f32 %v2323_v9, %v4482_v54 }
 0x318   : > { %2372 = vst [vmem:[#allocation3 + $0x30] sm:$0xff] %v2356_v30  ;;  %v2357_v17 = vadd.f32 %v2341_v55, %v4493_v63 }
 0x319   : > { %2370 = vst [vmem:[#allocation3 + $0x20] sm:$0xff] %v2354_v58  ;;  %v2355_v20 = vadd.f32 %v2339_v11, %v4493_v63  ;;  %v2384_v12 = vld [vmem:[#allocation3 + $0x18] ss:$3 sm:$0x1] }
 0x31a   : > { %v2388_v50 = vld [vmem:[#allocation3 + $0x19] ss:$3 sm:$0x1]  ;;  %2373 = vst [vmem:[#allocation3 + $0x38] sm:$0xff] %v2357_v17  ;;  %v2382_v16 = vld [vmem:[#allocation3] ss:$3 sm:$0xff] }
 0x31b   : > { %v2390_v14 = vmax.f32 %v2384_v12, %v2388_v50  ;;  %2371 = vst [vmem:[#allocation3 + $0x28] sm:$0xff] %v2355_v20  ;;  %v2394_v57 = vld [vmem:[#allocation3 + $0x1a] ss:$3 sm:$0x1]  ;;  %v2386_v5 = vld [vmem:[#allocation3 + $0x1] ss:$3 sm:$0xff] }
 0x31c   : > { %v2389_v2 = vmax.f32 %v2382_v16, %v2386_v5  ;;  %v2392_v26 = vld [vmem:[#allocation3 + $0x2] ss:$3 sm:$0xff] }
 0x31d   : > { %v2396_v33 = vmax.f32 %v2390_v14, %v2394_v57 }
 0x31e   : > { %v4702_v59 = vmax.f32 %v2389_v2, %v2392_v26 }
 0x31f   : > { %2398 = vst [vmem:[#allocation4 + $0x8] sm:$0x1] %v2396_v33 }
 0x321   : > { %v2402_v10 = vld [vmem:[#allocation3 + $0x38] ss:$3 sm:$0x1]  ;;  %v2406_v21 = vld [vmem:[#allocation3 + $0x39] ss:$3 sm:$0x1] }
 0x322   : > { %v2408_v23 = vmax.f32 %v2402_v10, %v2406_v21  ;;  %v2412_v39 = vld [vmem:[#allocation3 + $0x3a] ss:$3 sm:$0x1]  ;;  %v2400_v32 = vld [vmem:[#allocation3 + $0x20] ss:$3 sm:$0xff] }
 0x323   : > { %v2404_v35 = vld [vmem:[#allocation3 + $0x21] ss:$3 sm:$0xff]  ;;  %v2410_v1 = vld [vmem:[#allocation3 + $0x22] ss:$3 sm:$0xff] }
 0x324   : > { %v2414_v27 = vmax.f32 %v2408_v23, %v2412_v39  ;;  %v2407_v28 = vmax.f32 %v2400_v32, %v2404_v35 }
 0x326   : > { %v4704_v46 = vld [vmem:[#allocation4 + $0x8] sm:$0xff]  ;;  %2416 = vst [vmem:[#allocation4 + $0x18] sm:$0x1] %v2414_v27  ;;  %v4708_v4 = vmax.f32 %v2407_v28, %v2410_v1 }
 0x327   : > { %v2461_v48 = vpack.c.bf16 %v4704_v46, %v4702_v59 }
 0x329   : > { %3678 = vmatprep.mubr.bf16.mxu0 %v2461_v48 }
 0x32d   : > { %v4710_v36 = vld [vmem:[#allocation4 + $0x18] sm:$0xff] }
 0x32e   : > { %v2462_v37 = vpack.c.bf16 %v4710_v36, %v4708_v4 }
 0x330   : > { %3679 = vmatmul.mubr.bf16.vlgmr.msra.gmra.mrb[56].mxu0 %v2462_v37 }
 0x331   : > { %3711 = vmatpush3.bf16.msra.mxu0 %v4599_v56 }
 0x332   : > { %3712 = vmatprep.subr.bf16.mxu0 %v4608_v60 }
 0x335   : > { %3713 = vmatpush3.bf16.msra.mxu0 %v4608_v60 }
 0x336   : > { %3714 = vmatprep.subr.bf16.mxu0 %v4617_v62 }
 0x339   : > { %3715 = vmatpush3.bf16.msra.mxu0 %v4617_v62 }
 0x33a   : > { %3716 = vmatprep.subr.bf16.mxu0 %v4626_v3 }
 0x33d   : > { %3717 = vmatpush3.bf16.msra.mxu0 %v4626_v3 }
 0x33e   : > { %3718 = vmatprep.subr.bf16.mxu0 %v4635_v6 }
 0x341   : > { %3719 = vmatpush3.bf16.msra.mxu0 %v4635_v6 }
 0x342   : > { %3720 = vmatprep.subr.bf16.mxu0 %v4644_v24 }
 0x345   : > { %3721 = vmatpush3.bf16.msra.mxu0 %v4644_v24 }
 0x346   : > { %3722 = vmatprep.subr.bf16.mxu0 %v4650_v8 }
 0x349   : > { %3723 = vmatpush3.bf16.msra.mxu0 %v4650_v8 }
 0x34a   : > { %3724 = vmatprep.subr.bf16.mxu0 %v4659_v49 }
 0x34d   : > { %v3656_v34 = vpop.f32.mrb[48].mxu1  ;;  %3725 = vmatpush3.bf16.msra.mxu0 %v4659_v49 }
 0x34e   : > { %v2280_v40 = vadd.f32 %v3656_v34, %v4474_v51  ;;  %v2271_v41 = vpop.f32.mrb[49].mxu1 }
 0x34f   : > { %v2272_v38 = vadd.f32 %v2271_v41, %v4474_v51  ;;  %v3657_v45 = vpop.f32.mrb[50].mxu1 }
 0x350   : > { %v2312_v0 = vadd.f32 %v2280_v40, %v4541_v44  ;;  %v2283_v47 = vadd.f32 %v3657_v45, %v4474_v51  ;;  %v2274_v22 = vpop.f32.mrb[51].mxu1 }
 0x351   : > { %v2310_v19 = vadd.f32 %v2272_v38, %v4544_v61  ;;  %v2275_v29 = vadd.f32 %v2274_v22, %v4474_v51 }
 0x352   : > { %v2328_v13 = vmax.f32 %v2312_v0, 0.0  ;;  %v2313_v52 = vadd.f32 %v2283_v47, %v4549_v53 }
 0x353   : > { %v2326_v43 = vmax.f32 %v2310_v19, 0.0  ;;  %v2311_v9 = vadd.f32 %v2275_v29, %v4554_v7 }
 0x354   : > { %v2344_v30 = vmul.f32 %v2328_v13, %v4482_v54  ;;  %v2329_v55 = vmax.f32 %v2313_v52, 0.0 }
 0x355   : > { %v2342_v58 = vmul.f32 %v2326_v43, %v4482_v54  ;;  %v2327_v11 = vmax.f32 %v2311_v9, 0.0  ;;  %v3660_v44 = vpop.f32.mrb[52].mxu1 }
 0x356   : > { %v2360_v17 = vadd.f32 %v2344_v30, %v4493_v63  ;;  %v2345_v20 = vmul.f32 %v2329_v55, %v4482_v54  ;;  %v2296_v61 = vadd.f32 %v3660_v44, %v4474_v51  ;;  %v2287_v12 = vpop.f32.mrb[53].mxu1 }
 0x357   : > { %v2358_v50 = vadd.f32 %v2342_v58, %v4493_v63  ;;  %v2343_v53 = vmul.f32 %v2327_v11, %v4482_v54  ;;  %v2288_v7 = vadd.f32 %v2287_v12, %v4474_v51  ;;  %v3661_v14 = vpop.f32.mrb[54].mxu1  ;;  %v3878_v12 = vld [vmem:[%s4966_s4] sm:$0xff] }
 0x358   : > { %2376 = vst [vmem:[#allocation3 + $0x50] sm:$0xff] %v2360_v17  ;;  %v2361_v57 = vadd.f32 %v2345_v20, %v4493_v63  ;;  %v2316_v33 = vadd.f32 %v2296_v61, %v4566_v31  ;;  %v2299_v16 = vadd.f32 %v3661_v14, %v4474_v51  ;;  %v2290_v5 = vpop.f32.mrb[55].mxu1  ;;  %v2467_v61 = vsub.s32 4, %v4336_v42 }
 0x359   : > { %2374 = vst [vmem:[#allocation3 + $0x40] sm:$0xff] %v2358_v50  ;;  %v2359_v2 = vadd.f32 %v2343_v53, %v4493_v63  ;;  %v2314_v10 = vadd.f32 %v2288_v7, %v4571_v15  ;;  %v2291_v21 = vadd.f32 %v2290_v5, %v4474_v51  ;;  %v2592_v53 = vsub.s32 5, %v4336_v42 }
 0x35a   : > { %2377 = vst [vmem:[#allocation3 + $0x58] sm:$0xff] %v2361_v57  ;;  %v2332_v23 = vmax.f32 %v2316_v33, 0.0  ;;  %v2317_v26 = vadd.f32 %v2299_v16, %v4577_v18  ;;  %v4774_v50 = vrot.slane %v3878_v12, %v2467_v61  ;;  %v2604_v14 = vsub.s32 6, %v4336_v42 }
 0x35b   : > { %2375 = vst [vmem:[#allocation3 + $0x48] sm:$0xff] %v2359_v2  ;;  %v2330_v39 = vmax.f32 %v2314_v10, 0.0  ;;  %v2315_v27 = vadd.f32 %v2291_v21, %v4582_v25  ;;  %v4781_v33 = vrot.slane %v3878_v12, %v2592_v53 }
 0x35c   : > { %v2348_v31 = vmul.f32 %v2332_v23, %v4482_v54  ;;  %v2333_v32 = vmax.f32 %v2317_v26, 0.0  ;;  %v4791_v26 = vrot.slane %v3878_v12, %v2604_v14 }
 0x35d   : > { %v2346_v35 = vmul.f32 %v2330_v39, %v4482_v54  ;;  %v2331_v48 = vmax.f32 %v2315_v27, 0.0 }
 0x35e   : > { %v2364_v28 = vadd.f32 %v2348_v31, %v4493_v63  ;;  %v2349_v15 = vmul.f32 %v2333_v32, %v4482_v54 }
 0x35f   : > { %v2362_v51 = vadd.f32 %v2346_v35, %v4493_v63  ;;  %v2347_v1 = vmul.f32 %v2331_v48, %v4482_v54 }
 0x360   : > { %2380 = vst [vmem:[#allocation3 + $0x70] sm:$0xff] %v2364_v28  ;;  %v2365_v18 = vadd.f32 %v2349_v15, %v4493_v63 }
 0x361   : > { %2378 = vst [vmem:[#allocation3 + $0x60] sm:$0xff] %v2362_v51  ;;  %v2363_v25 = vadd.f32 %v2347_v1, %v4493_v63  ;;  %v2420_v37 = vld [vmem:[#allocation3 + $0x58] ss:$3 sm:$0x1] }
 0x362   : > { %v2424_v34 = vld [vmem:[#allocation3 + $0x59] ss:$3 sm:$0x1]  ;;  %2381 = vst [vmem:[#allocation3 + $0x78] sm:$0xff] %v2365_v18  ;;  %v2418_v45 = vld [vmem:[#allocation3 + $0x40] ss:$3 sm:$0xff] }
 0x363   : > { %v2426_v40 = vmax.f32 %v2420_v37, %v2424_v34  ;;  %2379 = vst [vmem:[#allocation3 + $0x68] sm:$0xff] %v2363_v25  ;;  %v2430_v41 = vld [vmem:[#allocation3 + $0x5a] ss:$3 sm:$0x1]  ;;  %v2422_v0 = vld [vmem:[#allocation3 + $0x41] ss:$3 sm:$0xff] }
 0x364   : > { %v2425_v47 = vmax.f32 %v2418_v45, %v2422_v0  ;;  %v2428_v29 = vld [vmem:[#allocation3 + $0x42] ss:$3 sm:$0xff] }
 0x365   : > { %v2432_v38 = vmax.f32 %v2426_v40, %v2430_v41 }
 0x366   : > { %v4761_v52 = vmax.f32 %v2425_v47, %v2428_v29 }
 0x367   : > { %2434 = vst [vmem:[#allocation4 + $0x28] sm:$0x1] %v2432_v38 }
 0x369   : > { %v2438_v22 = vld [vmem:[#allocation3 + $0x78] ss:$3 sm:$0x1]  ;;  %v2442_v19 = vld [vmem:[#allocation3 + $0x79] ss:$3 sm:$0x1] }
 0x36a   : > { %v2444_v54 = vmax.f32 %v2438_v22, %v2442_v19  ;;  %v2448_v13 = vld [vmem:[#allocation3 + $0x7a] ss:$3 sm:$0x1]  ;;  %v2436_v9 = vld [vmem:[#allocation3 + $0x60] ss:$3 sm:$0xff] }
 0x36b   : > { %v2440_v30 = vld [vmem:[#allocation3 + $0x61] ss:$3 sm:$0xff]  ;;  %v2446_v11 = vld [vmem:[#allocation3 + $0x62] ss:$3 sm:$0xff] }
 0x36c   : > { %v2450_v43 = vmax.f32 %v2444_v54, %v2448_v13  ;;  %v2443_v58 = vmax.f32 %v2436_v9, %v2440_v30 }
 0x36e   : > { %v4763_v63 = vld [vmem:[#allocation4 + $0x28] sm:$0xff]  ;;  %2452 = vst [vmem:[#allocation4 + $0x38] sm:$0x1] %v2450_v43  ;;  %v2449_v44 = vmax.f32 %v2443_v58, %v2446_v11 }
 0x36f   : > { %v2463_v55 = vpack.c.bf16 %v4763_v63, %v4761_v52 }
 0x371   : > { %3682 = vmatprep.mubr.bf16.mxu0 %v2463_v55 }
 0x375   : > { %v4767_v17 = vld [vmem:[#allocation4 + $0x38] sm:$0xff] }
 0x376   : > { %v2464_v20 = vpack.c.bf16 %v4767_v17, %v2449_v44 }
 0x378   : > { %3683 = vmatmul.mubr.bf16.gmra.mrb[60].mxu0 %v2464_v20 }
 0x403   : > { %v3680_v7 = vpop.f32.mrb[56].mxu0 }
 0x404   : > { %v4779_v57 = vadd.f32 %v3680_v7, %v4774_v50  ;;  %v2551_v16 = vpop.f32.mrb[57].mxu0 }
 0x405   : > { %v4784_v5 = vadd.f32 %v2551_v16, %v4774_v50  ;;  %v3681_v2 = vpop.f32.mrb[58].mxu0 }
 0x406   : > { %v2584_v10 = vadd.f32 %v4779_v57, %v4708_v4  ;;  %v4789_v21 = vadd.f32 %v3681_v2, %v4774_v50  ;;  %v2554_v23 = vpop.f32.mrb[59].mxu0 }
 0x407   : > { %v2582_v42 = vadd.f32 %v4784_v5, %v4702_v59  ;;  %v4796_v39 = vadd.f32 %v2554_v23, %v4774_v50 }
 0x408   : > { %v2596_v27 = vmul.f32 %v4781_v33, %v2584_v10  ;;  %v2585_v31 = vadd.f32 %v4789_v21, %v4710_v36 }
 0x409   : > { %v2594_v32 = vmul.f32 %v4781_v33, %v2582_v42  ;;  %v2583_v4 = vadd.f32 %v4796_v39, %v4704_v46 }
 0x40a   : > { %v2597_v35 = vmul.f32 %v4781_v33, %v2585_v31  ;;  %v2608_v59 = vadd.f32 %v4791_v26, %v2596_v27 }
 0x40b   : > { %v2595_v48 = vmul.f32 %v4781_v33, %v2583_v4  ;;  %v2606_v28 = vadd.f32 %v4791_v26, %v2594_v32 }
 0x40c   : > { %v2609_v15 = vadd.f32 %v4791_v26, %v2597_v35  ;;  %v2616_v25 = vmax.f32 %v2608_v59, 0.0 }
 0x40d   : > { %v2607_v51 = vadd.f32 %v4791_v26, %v2595_v48  ;;  %v2614_v18 = vmax.f32 %v2606_v28, 0.0 }
 0x40e   : > { %v2617_v1 = vmax.f32 %v2609_v15, 0.0 }
 0x40f   : > { %v2615_v36 = vmax.f32 %v2607_v51, 0.0 }
 0x410   : > { %v2623_v34 = vpack.c.bf16 %v2617_v1, %v2616_v25 }
 0x411   : > { %v2622_v37 = vpack.c.bf16 %v2615_v36, %v2614_v18 }
 0x413   : > { %3702 = vmatprep.mubr.bf16.mxu1 %v2622_v37 }
 0x414   : > { %3703 = vmatmul.mubr.bf16.vlgmr.msra.gmra.mrb[56].mxu1 %v2623_v34 }
 0x415   : > { %3731 = vmatpush3.bf16.msra.mxu1 %v4599_v56 }
 0x416   : > { %3732 = vmatprep.subr.bf16.mxu1 %v4608_v60 }
 0x419   : > { %3733 = vmatpush3.bf16.msra.mxu1 %v4608_v60 }
 0x41a   : > { %3734 = vmatprep.subr.bf16.mxu1 %v4617_v62 }
 0x41d   : > { %3735 = vmatpush3.bf16.msra.mxu1 %v4617_v62 }
 0x41e   : > { %3736 = vmatprep.subr.bf16.mxu1 %v4626_v3 }
 0x421   : > { %3737 = vmatpush3.bf16.msra.mxu1 %v4626_v3 }
 0x422   : > { %3738 = vmatprep.subr.bf16.mxu1 %v4635_v6 }
 0x425   : > { %3739 = vmatpush3.bf16.msra.mxu1 %v4635_v6 }
 0x426   : > { %3740 = vmatprep.subr.bf16.mxu1 %v4644_v24 }
 0x429   : > { %3741 = vmatpush3.bf16.msra.mxu1 %v4644_v24 }
 0x42a   : > { %3742 = vmatprep.subr.bf16.mxu1 %v4650_v8 }
 0x42d   : > { %3743 = vmatpush3.bf16.msra.mxu1 %v4650_v8 }
 0x42e   : > { %3744 = vmatprep.subr.bf16.mxu1 %v4659_v49 }
 0x431   : > { %3745 = vmatpush3.bf16.msra.mxu1 %v4659_v49 }
 0x44b   : > { %v3684_v56 = vpop.f32.mrb[60].mxu0 }
 0x44c   : > { %v4826_v60 = vadd.f32 %v3684_v56, %v4774_v50  ;;  %v2567_v62 = vpop.f32.mrb[61].mxu0 }
 0x44d   : > { %v4829_v3 = vadd.f32 %v2567_v62, %v4774_v50  ;;  %v3685_v6 = vpop.f32.mrb[62].mxu0 }
 0x44e   : > { %v2588_v46 = vadd.f32 %v4826_v60, %v2449_v44  ;;  %v4833_v24 = vadd.f32 %v3685_v6, %v4774_v50  ;;  %v2570_v40 = vpop.f32.mrb[63].mxu0 }
 0x44f   : > { %v2586_v8 = vadd.f32 %v4829_v3, %v4761_v52  ;;  %v4838_v49 = vadd.f32 %v2570_v40, %v4774_v50 }
 0x450   : > { %v2600_v41 = vmul.f32 %v4781_v33, %v2588_v46  ;;  %v2589_v38 = vadd.f32 %v4833_v24, %v4767_v17 }
 0x451   : > { %v2598_v45 = vmul.f32 %v4781_v33, %v2586_v8  ;;  %v2587_v0 = vadd.f32 %v4838_v49, %v4763_v63 }
 0x452   : > { %v2601_v47 = vmul.f32 %v4781_v33, %v2589_v38  ;;  %v2612_v54 = vadd.f32 %v4791_v26, %v2600_v41 }
 0x453   : > { %v2599_v22 = vmul.f32 %v4781_v33, %v2587_v0  ;;  %v2610_v19 = vadd.f32 %v4791_v26, %v2598_v45 }
 0x454   : > { %v2613_v29 = vadd.f32 %v4791_v26, %v2601_v47  ;;  %v2620_v30 = vmax.f32 %v2612_v54, 0.0 }
 0x455   : > { %v2611_v13 = vadd.f32 %v4791_v26, %v2599_v22  ;;  %v2618_v43 = vmax.f32 %v2610_v19, 0.0 }
 0x456   : > { %v2621_v52 = vmax.f32 %v2613_v29, 0.0 }
 0x457   : > { %v2619_v9 = vmax.f32 %v2611_v13, 0.0 }
 0x458   : > { %v2625_v58 = vpack.c.bf16 %v2621_v52, %v2620_v30 }
 0x459   : > { %v2624_v55 = vpack.c.bf16 %v2619_v9, %v2618_v43 }
 0x45b   : > { %3706 = vmatprep.mubr.bf16.mxu1 %v2624_v55 }
 0x45c   : > { %3707 = vmatmul.mubr.bf16.gmra.mrb[60].mxu1 %v2625_v58 }
 0x4e7   : > { %v3704_v63 = vpop.f32.mrb[56].mxu1 }
 0x4e8   : > { %v2669_v11 = vadd.f32 %v3704_v63, %v4774_v50  ;;  %v2660_v44 = vpop.f32.mrb[57].mxu1 }
 0x4e9   : > { %v2661_v17 = vadd.f32 %v2660_v44, %v4774_v50  ;;  %v3705_v20 = vpop.f32.mrb[58].mxu1 }
 0x4ea   : > { %v2693_v61 = vadd.f32 %v2669_v11, %v4779_v57  ;;  %v2672_v12 = vadd.f32 %v3705_v20, %v4774_v50  ;;  %v2663_v53 = vpop.f32.mrb[59].mxu1 }
 0x4eb   : > { %v2691_v7 = vadd.f32 %v2661_v17, %v4784_v5  ;;  %v2664_v14 = vadd.f32 %v2663_v53, %v4774_v50 }
 0x4ec   : > { %v2701_v16 = vmax.f32 %v2693_v61, 0.0  ;;  %v2694_v2 = vadd.f32 %v2672_v12, %v4789_v21 }
 0x4ed   : > { %v2699_v10 = vmax.f32 %v2691_v7, 0.0  ;;  %v2692_v23 = vadd.f32 %v2664_v14, %v4796_v39 }
 0x4ee   : > { %v2709_v42 = vmul.f32 %v2701_v16, %v4781_v33  ;;  %v2702_v27 = vmax.f32 %v2694_v2, 0.0 }
 0x4ef   : > { %v2707_v31 = vmul.f32 %v2699_v10, %v4781_v33  ;;  %v2700_v32 = vmax.f32 %v2692_v23, 0.0 }
 0x4f0   : > { %v2717_v57 = vadd.f32 %v2709_v42, %v4791_v26  ;;  %v2710_v4 = vmul.f32 %v2702_v27, %v4781_v33 }
 0x4f1   : > { %v2715_v5 = vadd.f32 %v2707_v31, %v4791_v26  ;;  %v2708_v35 = vmul.f32 %v2700_v32, %v4781_v33 }
 0x4f2   : > { %2725 = vst [vmem:[#allocation4 + $0x10] sm:$0xff] %v2717_v57  ;;  %v2718_v21 = vadd.f32 %v2710_v4, %v4791_v26 }
 0x4f3   : > { %2723 = vst [vmem:[#allocation4] sm:$0xff] %v2715_v5  ;;  %v2716_v39 = vadd.f32 %v2708_v35, %v4791_v26 }
 0x4f4   : > { %2726 = vst [vmem:[#allocation4 + $0x18] sm:$0xff] %v2718_v21 }
 0x4f5   : > { %2724 = vst [vmem:[#allocation4 + $0x8] sm:$0xff] %v2716_v39 }
 0x4f9   : > { %v2740_v48 = vld [vmem:[#allocation4 + $0x10] ss:$3 sm:$0x7]  ;;  %v2742_v28 = vld [vmem:[#allocation4 + $0x11] ss:$3 sm:$0x7] }
 0x4fa   : > { %v2743_v59 = vmax.f32 %v2740_v48, %v2742_v28  ;;  %v2731_v15 = vld [vmem:[#allocation4] ss:$3 sm:$0x7]  ;;  %v2733_v51 = vld [vmem:[#allocation4 + $0x1] ss:$3 sm:$0x7] }
 0x4fb   : > { %v2734_v1 = vmax.f32 %v2731_v15, %v2733_v51  ;;  %v2745_v18 = vld [vmem:[#allocation4 + $0x12] ss:$3 sm:$0x7] }
 0x4fc   : > { %v2746_v36 = vmax.f32 %v2743_v59, %v2745_v18  ;;  %v2736_v25 = vld [vmem:[#allocation4 + $0x2] ss:$3 sm:$0x7] }
 0x4fd   : > { %v2737_v37 = vmax.f32 %v2734_v1, %v2736_v25 }
 0x4fe   : > { %2747 = vst [vmem:[#allocation3 + $0x8] sm:$0x7] %v2746_v36 }
 0x4ff   : > { %2738 = vst [vmem:[#allocation3] sm:$0x7] %v2737_v37 }
 0x505   : > { %v2767_v34 = vld [vmem:[#allocation3 + $0x8] sm:$0xff] }
 0x506   : > { %v2766_v56 = vld [vmem:[#allocation3] sm:$0xff] }
 0x507   : > { %v2770_v62 = vpack.c.bf16 %v2767_v34, %v2766_v56 }
 0x509   : > { %3726 = vmatprep.mubr.bf16.mxu0 %v2770_v62 }
 0x52f   : > { %v3708_v6 = vpop.f32.mrb[60].mxu1 }
 0x530   : > { %v2685_v46 = vadd.f32 %v3708_v6, %v4774_v50  ;;  %v2676_v40 = vpop.f32.mrb[61].mxu1 }
 0x531   : > { %v2677_v8 = vadd.f32 %v2676_v40, %v4774_v50  ;;  %v3709_v41 = vpop.f32.mrb[62].mxu1 }
 0x532   : > { %v2697_v38 = vadd.f32 %v2685_v46, %v4826_v60  ;;  %v2688_v45 = vadd.f32 %v3709_v41, %v4774_v50  ;;  %v2679_v0 = vpop.f32.mrb[63].mxu1 }
 0x533   : > { %v2695_v47 = vadd.f32 %v2677_v8, %v4829_v3  ;;  %v2680_v22 = vadd.f32 %v2679_v0, %v4774_v50 }
 0x534   : > { %v2705_v19 = vmax.f32 %v2697_v38, 0.0  ;;  %v2698_v54 = vadd.f32 %v2688_v45, %v4833_v24 }
 0x535   : > { %v2703_v29 = vmax.f32 %v2695_v47, 0.0  ;;  %v2696_v13 = vadd.f32 %v2680_v22, %v4838_v49 }
 0x536   : > { %v2713_v52 = vmul.f32 %v2705_v19, %v4781_v33  ;;  %v2706_v43 = vmax.f32 %v2698_v54, 0.0 }
 0x537   : > { %v2711_v9 = vmul.f32 %v2703_v29, %v4781_v33  ;;  %v2704_v30 = vmax.f32 %v2696_v13, 0.0 }
 0x538   : > { %v2721_v60 = vadd.f32 %v2713_v52, %v4791_v26  ;;  %v2714_v55 = vmul.f32 %v2706_v43, %v4781_v33 }
 0x539   : > { %v2719_v3 = vadd.f32 %v2711_v9, %v4791_v26  ;;  %v2712_v58 = vmul.f32 %v2704_v30, %v4781_v33 }
 0x53a   : > { %2729 = vst [vmem:[#allocation4 + $0x30] sm:$0xff] %v2721_v60  ;;  %v2722_v24 = vadd.f32 %v2714_v55, %v4791_v26 }
 0x53b   : > { %2727 = vst [vmem:[#allocation4 + $0x20] sm:$0xff] %v2719_v3  ;;  %v2720_v49 = vadd.f32 %v2712_v58, %v4791_v26 }
 0x53c   : > { %2730 = vst [vmem:[#allocation4 + $0x38] sm:$0xff] %v2722_v24 }
 0x53d   : > { %2728 = vst [vmem:[#allocation4 + $0x28] sm:$0xff] %v2720_v49 }
 0x541   : > { %v2758_v63 = vld [vmem:[#allocation4 + $0x30] ss:$3 sm:$0x7]  ;;  %v2760_v11 = vld [vmem:[#allocation4 + $0x31] ss:$3 sm:$0x7] }
 0x542   : > { %v2761_v44 = vmax.f32 %v2758_v63, %v2760_v11  ;;  %v2749_v17 = vld [vmem:[#allocation4 + $0x20] ss:$3 sm:$0x7]  ;;  %v2751_v20 = vld [vmem:[#allocation4 + $0x21] ss:$3 sm:$0x7] }
 0x543   : > { %v2752_v61 = vmax.f32 %v2749_v17, %v2751_v20  ;;  %v2763_v12 = vld [vmem:[#allocation4 + $0x32] ss:$3 sm:$0x7] }
 0x544   : > { %v2764_v53 = vmax.f32 %v2761_v44, %v2763_v12  ;;  %v2754_v7 = vld [vmem:[#allocation4 + $0x22] ss:$3 sm:$0x7] }
 0x545   : > { %v2755_v14 = vmax.f32 %v2752_v61, %v2754_v7 }
 0x546   : > { %2765 = vst [vmem:[#allocation3 + $0x18] sm:$0x7] %v2764_v53 }
 0x547   : > { %2756 = vst [vmem:[#allocation3 + $0x10] sm:$0x7] %v2755_v14 }
 0x54d   : > { %v2769_v16 = vld [vmem:[#allocation3 + $0x18] sm:$0xff] }
 0x54e   : > { %v2768_v2 = vld [vmem:[#allocation3 + $0x10] sm:$0xff] }
 0x54f   : > { %v2771_v10 = vpack.c.bf16 %v2769_v16, %v2768_v2 }
 0x551   : > { %3727 = vmatmul.mubr.bf16.vlgmr.msra.gmra.mrb[64].mxu0 %v2771_v10 }
 0x624   : > { %v3728_v23 = vpop.f32.mrb[64].mxu0 }
 0x625   : > { %v2815_v42 = vadd.f32 %v3728_v23, %v4774_v50  ;;  %v2806_v27 = vpop.f32.mrb[65].mxu0 }
 0x626   : > { %v2807_v31 = vadd.f32 %v2806_v27, %v4774_v50  ;;  %v3729_v32 = vpop.f32.mrb[66].mxu0 }
 0x627   : > { %v2823_v57 = vadd.f32 %v2815_v42, %v2768_v2  ;;  %v2818_v4 = vadd.f32 %v3729_v32, %v4774_v50  ;;  %v2809_v5 = vpop.f32.mrb[67].mxu0 }
 0x628   : > { %v2821_v35 = vadd.f32 %v2807_v31, %v2766_v56  ;;  %v2810_v21 = vadd.f32 %v2809_v5, %v4774_v50 }
 0x629   : > { %v2827_v39 = vmul.f32 %v2823_v57, %v4781_v33  ;;  %v2824_v48 = vadd.f32 %v2818_v4, %v2769_v16 }
 0x62a   : > { %v2825_v28 = vmul.f32 %v2821_v35, %v4781_v33  ;;  %v2822_v59 = vadd.f32 %v2810_v21, %v2767_v34 }
 0x62b   : > { %v2828_v15 = vmul.f32 %v2824_v48, %v4781_v33  ;;  %v2831_v18 = vadd.f32 %v2827_v39, %v4791_v26 }
 0x62c   : > { %v2826_v51 = vmul.f32 %v2822_v59, %v4781_v33  ;;  %v2829_v1 = vadd.f32 %v2825_v28, %v4791_v26 }
 0x62d   : > { %v2832_v36 = vadd.f32 %v2828_v15, %v4791_v26  ;;  %v2835_v6 = vmax.f32 %v2831_v18, 0.0 }
 0x62e   : > { %v2830_v25 = vadd.f32 %v2826_v51, %v4791_v26  ;;  %v2833_v56 = vmax.f32 %v2829_v1, 0.0 }
 0x62f   : > { %v2836_v37 = vmax.f32 %v2832_v36, 0.0 }
 0x630   : > { %v2834_v62 = vmax.f32 %v2830_v25, 0.0 }
 0x631   : > { %v2838_v40 = vpack.c.bf16 %v2836_v37, %v2835_v6 }
 0x632   : > { %v2837_v46 = vpack.c.bf16 %v2834_v62, %v2833_v56 }
 0x634   : > { %3746 = vmatprep.mubr.bf16.mxu1 %v2837_v46 }
 0x635   : > { %3747 = vmatmul.mubr.bf16.vlgmr.msra.gmra.mrb[64].mxu1 %v2838_v40 }
 0x708   : > { %v3748_v34 = vpop.f32.mrb[64].mxu1 }
 0x709   : > { %v2882_v8 = vadd.f32 %v3748_v34, %v4774_v50  ;;  %v2873_v41 = vpop.f32.mrb[65].mxu1 }
 0x70a   : > { %v2874_v38 = vadd.f32 %v2873_v41, %v4774_v50  ;;  %v3749_v45 = vpop.f32.mrb[66].mxu1 }
 0x70b   : > { %v2890_v0 = vadd.f32 %v2882_v8, %v2815_v42  ;;  %v2885_v47 = vadd.f32 %v3749_v45, %v4774_v50  ;;  %v2876_v22 = vpop.f32.mrb[67].mxu1 }
 0x70c   : > { %v2888_v19 = vadd.f32 %v2874_v38, %v2807_v31  ;;  %v2877_v54 = vadd.f32 %v2876_v22, %v4774_v50 }
 0x70d   : > { %v2894_v29 = vmax.f32 %v2890_v0, 0.0  ;;  %v2891_v13 = vadd.f32 %v2885_v47, %v2818_v4 }
 0x70e   : > { %v2892_v52 = vmax.f32 %v2888_v19, 0.0  ;;  %v2889_v43 = vadd.f32 %v2877_v54, %v2810_v21 }
 0x70f   : > { %v2898_v9 = vmul.f32 %v2894_v29, %v4781_v33  ;;  %v2895_v30 = vmax.f32 %v2891_v13, 0.0 }
 0x710   : > { %v2896_v60 = vmul.f32 %v2892_v52, %v4781_v33  ;;  %v2893_v55 = vmax.f32 %v2889_v43, 0.0 }
 0x711   : > { %v2902_v3 = vadd.f32 %v2898_v9, %v4791_v26  ;;  %v2899_v58 = vmul.f32 %v2895_v30, %v4781_v33 }
 0x712   : > { %v2900_v24 = vadd.f32 %v2896_v60, %v4791_v26  ;;  %v2897_v49 = vmul.f32 %v2893_v55, %v4781_v33 }
 0x713   : > { %2906 = vst [vmem:[#allocation3 + $0x10] sm:$0xff] %v2902_v3  ;;  %v2903_v50 = vadd.f32 %v2899_v58, %v4791_v26 }
 0x714   : > { %2904 = vst [vmem:[#allocation3] sm:$0xff] %v2900_v24  ;;  %v2901_v63 = vadd.f32 %v2897_v49, %v4791_v26 }
 0x715   : > { %2907 = vst [vmem:[#allocation3 + $0x18] sm:$0xff] %v2903_v50 }
 0x716   : > { %2905 = vst [vmem:[#allocation3 + $0x8] sm:$0xff] %v2901_v63 }
 0x71a   : > { %v2925_v11 = vld [vmem:[#allocation3 + $0x10] ss:$3 sm:$0x1]  ;;  %v2927_v44 = vld [vmem:[#allocation3 + $0x11] ss:$3 sm:$0x1] }
 0x71b   : > { %v2908_v17 = vld [vmem:[#allocation3] ss:$3 sm:$0x1]  ;;  %v2909_v20 = vld [vmem:[#allocation3 + $0x1] ss:$3 sm:$0x1]  ;;  %v2928_v61 = vmax.f32 %v2925_v11, %v2927_v44 }
 0x71c   : > { %v2910_v12 = vmax.f32 %v2908_v17, %v2909_v20  ;;  %v2911_v53 = vld [vmem:[#allocation3 + $0x2] ss:$3 sm:$0x1]  ;;  %v2930_v33 = vld [vmem:[#allocation3 + $0x12] ss:$3 sm:$0x1] }
 0x71d   : > { %v2915_v7 = vld [vmem:[#allocation3 + $0x8] ss:$3 sm:$0x1]  ;;  %v2917_v14 = vld [vmem:[#allocation3 + $0x9] ss:$3 sm:$0x1]  ;;  %v2931_v16 = vmax.f32 %v2928_v61, %v2930_v33 }
 0x71e   : > { %v2912_v2 = vmax.f32 %v2910_v12, %v2911_v53  ;;  %v2918_v10 = vmax.f32 %v2915_v7, %v2917_v14  ;;  %v2934_v23 = vld [vmem:[#allocation3 + $0x18] ss:$3 sm:$0x1]  ;;  %v2920_v26 = vld [vmem:[#allocation3 + $0xa] ss:$3 sm:$0x1] }
 0x71f   : > { %3226 = vst [vmem:[%s220_s13 + $0x2] sm:$0x1] %v2931_v16  ;;  %v2935_v42 = vld [vmem:[#allocation3 + $0x19] ss:$3 sm:$0x1] }
 0x720   : > { %2913 = vst [vmem:[%s220_s13] sm:$0x1] %v2912_v2  ;;  %v2921_v27 = vmax.f32 %v2918_v10, %v2920_v26  ;;  %v2936_v31 = vmax.f32 %v2934_v23, %v2935_v42  ;;  %v2937_v32 = vld [vmem:[#allocation3 + $0x1a] ss:$3 sm:$0x1] }
 0x722   : > { %3225 = vst [vmem:[%s220_s13 + $0x1] sm:$0x1] %v2921_v27  ;;  %v2938_v57 = vmax.f32 %v2936_v31, %v2937_v32 }
 0x724   : > { %3227 = vst [vmem:[%s220_s13 + $0x3] sm:$0x1] %v2938_v57 }
 0x725   : > { %3892 = shalt.err (!%p3889_p3)
}
 0x726   : > { %s3893_s6 = scalar_lea.hbm %s4915_s17, 64  ;;  %s3897_s9 = scalar_lea.hbm %s4967_s5, 128 }
 0x727   : > { %p3894_p4 = scmp.ne.s32.totalorder %s4915_s17, %s3893_s6  ;;  %p3898_p9 = scmp.lt.u32.totalorder %s4915_s17, %s4967_s5 }
 0x728   : > { %p3899_p10 = scmp.lt.u32.totalorder %s3897_s9, %s3893_s6  ;;  %p3901_p12 = scmp.lt.u32.totalorder %s3893_s6, %s4915_s17 }
 0x729   : > { %p3895_p7 = pnand %p3894_p4, %p4014_p5 }
 0x72a   : > { %p3900_p11 = por %p3899_p10, %p3898_p9 }
 0x72b   : > { %p3896_p8 = pneg %p3895_p7 }
 0x72c   : > { %p3902_p13 = por %p3901_p12, %p3900_p11 }
 0x72e   : > { %p3903_p0 = pnand %p3902_p13, %p3896_p8 }
 0x730   : > { %3906 = shalt.err (!%p3903_p0)
}
 0x731   : > { %s3944_s12 = smov 16   ;;  %s3945_s13 = smov 1  }
 0x732   : > { %3815 = dma.vmem_to_hbm [thread:$0]  (%p4014_p5), %s4917_s14, 64, %s4915_s17, %s4921_s22, %s3944_s12, %s3944_s12, %s3945_s13  }
 0x733 PF: > { %p3821_p1 = scmp.ge.s32.totalorder %s3941_s21, 2  ;;  %s2970_s15 = sand.u32 1, %s3929_s18  }
 0x734   : > { %s2971_s16 = scalar_lea.sflag [#allocation6], %s2970_s15 }
 0x735   : > { %p3818_p2 = pnand %p3821_p1, %p4018_p6 }
 0x737   : > { %3924 = dma.done.wait (!%p3818_p2), %s2971_s16, 64  }
 0x738   : > { %3926 = vsyncadd (!%p3818_p2), %s2971_s16, 4294967232  ;;  %p15_p3 = scmp.ge.s32.totalorder %s4001_s24, 4   ;;  %s4970_s18 = smov %s3933_s19 }
 0x739   : > { %s4971_s19 = smov %s3937_s20  ;;  %s4972_s20 = smov %s4012_s27 }
 0x73a   : > { %s4973_s21 = smov %s4001_s24  ;;  %17 = sbr.rel (!%p15_p3) target bundleno = 3 (0x3), region = 146 }
 0x741   :  { %2976 = vsyncpa [#allocation6], 1 }
 0x742   :  { %2978 = vsyncpa [#allocation6 + $0x1], 1 }

</bundles_post_ra>
